<compile_context>
chip_gen: v5e
topology: v5e:2x2
jax: 0.10.0
libtpu: 0.0.40
codegen_flags: <defaults>
</compile_context>

<pallas_src>
import functools

import jax
import jax.numpy as jnp
from jax.experimental import pallas as pl
from jax.experimental.pallas import tpu as pltpu


def _round_up(v, m):
    return ((v + m - 1) // m) * m


def _sigmoid(v):
    # 1/(1+exp(-v)); saturates to the correct limits for large |v|.
    return 1.0 / (1.0 + jnp.exp(-v))


def egl_wmse_kernel(
    x_ref, yi_ref, yhat_ref,                 # streamed per batch tile
    w1_ref, b1_ref, w2_ref, b2_ref,          # MLP weights, VMEM-resident
    w3_ref, b3_ref, w4_ref, b4_ref,
    out_ref,                                 # (TB, 1) weighted MSE per row
    *, min_val,
):
    x = x_ref[...].astype(jnp.float32)

    # 4-layer MLP: Linear+ReLU x3, Linear+Sigmoid (dense_nn(..., num_layers=4)).
    h = jnp.maximum(
        jnp.dot(x, w1_ref[...], preferred_element_type=jnp.float32) + b1_ref[...], 0.0)
    h = jnp.maximum(
        jnp.dot(h, w2_ref[...], preferred_element_type=jnp.float32) + b2_ref[...], 0.0)
    h = jnp.maximum(
        jnp.dot(h, w3_ref[...], preferred_element_type=jnp.float32) + b3_ref[...], 0.0)
    w = _sigmoid(
        jnp.dot(h, w4_ref[...], preferred_element_type=jnp.float32) + b4_ref[...])

    # weights.clamp(min=min_val)
    w = jnp.maximum(w, min_val)

    # (Yhats - Yi)^2 * w  -> mean over the last (lane) axis.
    err = yhat_ref[...].astype(jnp.float32) - yi_ref[...].astype(jnp.float32)
    out_ref[...] = jnp.mean(err * err * w, axis=-1, keepdims=True)


def _weighted_mse_call(xi, yi, yhat, params, min_val, block_b):
    """xi: [B, x_dim], yi/yhat: [B, y_dim] -> weighted MSE per row, shape [B]."""
    B, x_dim = xi.shape
    y_dim = yi.shape[1]

    # Batch tile: multiple of 8 sublanes; big tiles amortize per-step overhead.
    tb = min(block_b, _round_up(B, 8))
    b_pad = _round_up(B, tb)
    if b_pad != B:
        pad = ((0, b_pad - B), (0, 0))
        xi = jnp.pad(xi, pad)
        yi = jnp.pad(yi, pad)
        yhat = jnp.pad(yhat, pad)
    grid = (b_pad // tb,)

    def batch_spec(d):
        return pl.BlockSpec((tb, d), lambda i: (i, 0))

    def resident_spec(shape):
        # Constant block index -> weight stays in VMEM across all grid steps.
        return pl.BlockSpec(shape, lambda i: (0, 0))

    in_specs = [
        batch_spec(x_dim), batch_spec(y_dim), batch_spec(y_dim),
        resident_spec(params["w1"].shape), resident_spec(params["b1"].shape),
        resident_spec(params["w2"].shape), resident_spec(params["b2"].shape),
        resident_spec(params["w3"].shape), resident_spec(params["b3"].shape),
        resident_spec(params["w4"].shape), resident_spec(params["b4"].shape),
    ]
    out_spec = pl.BlockSpec((tb, 1), lambda i: (i, 0))

    out = pl.pallas_call(
        functools.partial(egl_wmse_kernel, min_val=float(min_val)),
        out_shape=jax.ShapeDtypeStruct((b_pad, 1), jnp.float32),
        grid=grid,
        in_specs=in_specs,
        out_specs=out_spec,
        compiler_params=pltpu.CompilerParams(
            dimension_semantics=("parallel",)),   # megacore shard on v7x
    )(xi, yi, yhat,
      params["w1"], params["b1"], params["w2"], params["b2"],
      params["w3"], params["b3"], params["w4"], params["b4"])

    return out[:B, 0]


def _prepare_inputs(data_idx, yhats, X, Y):
    """Replicates EGLWeightedMSE.forward's index/reshape handling in plain JAX."""
    x_dim = int(X.size // X.shape[0])
    y_dim = int(Y.size // Y.shape[0])
    yhats = jnp.asarray(yhats, jnp.float32)
    if isinstance(data_idx, int):
        yhats = yhats.reshape(1, -1)
        idx = jnp.asarray([data_idx], dtype=jnp.int32)
    else:
        idx = jnp.asarray(data_idx)
        yhats = yhats[:, yhats.shape[1] // 2:]
    # TODO(synk): the row gather and int-vs-sequence dispatch stay in the JAX
    # wrapper (data-dependent gather / host control flow, not a tiled kernel op).
    xi = jnp.take(X, idx, axis=0).reshape(-1, x_dim).astype(jnp.float32)
    yi = jnp.take(Y, idx, axis=0).reshape(-1, y_dim).astype(jnp.float32)
    return xi, yi, yhats


def egl_weighted_mse_forward(data_idx, yhats, X, Y, params,
                             min_val=0.001, block_b=512):
    xi, yi, yh = _prepare_inputs(data_idx, yhats, X, Y)
    return _weighted_mse_call(xi, yi, yh, params, min_val, block_b)


def egl_weighted_mse_reference(data_idx, yhats, X, Y, params, min_val=0.001):
    """Pure-JAX replica of the PyTorch forward (for correctness checking)."""
    xi, yi, yh = _prepare_inputs(data_idx, yhats, X, Y)
    h = jnp.maximum(xi @ params["w1"] + params["b1"], 0.0)
    h = jnp.maximum(h @ params["w2"] + params["b2"], 0.0)
    h = jnp.maximum(h @ params["w3"] + params["b3"], 0.0)
    w = _sigmoid(h @ params["w4"] + params["b4"])
    sq = (yh - yi) ** 2
    return jnp.mean(sq * jnp.maximum(w, min_val), axis=-1)


def init_params(key, x_dim, y_dim, hidden=500):
    """PyTorch nn.Linear-style init; weights stored transposed as [in, out]."""
    def linear(k, fan_in, fan_out):
        kw, kb = jax.random.split(k)
        bound = 1.0 / jnp.sqrt(fan_in)
        w = jax.random.uniform(kw, (fan_in, fan_out), jnp.float32, -bound, bound)
        b = jax.random.uniform(kb, (1, fan_out), jnp.float32, -bound, bound)
        return w, b

    k1, k2, k3, k4 = jax.random.split(key, 4)
    p = {}
    p["w1"], p["b1"] = linear(k1, x_dim, hidden)
    p["w2"], p["b2"] = linear(k2, hidden, hidden)
    p["w3"], p["b3"] = linear(k3, hidden, hidden)
    p["w4"], p["b4"] = linear(k4, hidden, y_dim)
    return p


if __name__ == "__main__":
    # Small shapes consistent with the module (hidden=500 is hard-coded in dense_nn).
    N_data, x_dim, y_dim, hidden, B = 32, 16, 24, 500, 8
    min_val = 0.001

    key = jax.random.PRNGKey(0)
    kX, kY, kYh, kYh1, kI, kP = jax.random.split(key, 6)
    X = jax.random.normal(kX, (N_data, x_dim), jnp.float32)
    Y = jax.random.normal(kY, (N_data, y_dim), jnp.float32)
    params = init_params(kP, x_dim, y_dim, hidden)

    # --- Batched path: data_idx is a sequence -> Yhats uses its second half. ---
    data_idx = jax.random.randint(kI, (B,), 0, N_data)
    Yhats = jax.random.normal(kYh, (B, 2 * y_dim), jnp.float32)

    out = egl_weighted_mse_forward(data_idx, Yhats, X, Y, params, min_val)
    out = jax.block_until_ready(out)
    ref = egl_weighted_mse_reference(data_idx, Yhats, X, Y, params, min_val)
    assert out.shape == (B,), out.shape
    # Tolerance covers MXU vs XLA matmul precision differences for f32 inputs.
    assert jnp.allclose(out, ref, atol=2e-2, rtol=2e-2), (out, ref)

    # --- Scalar path: data_idx is a Python int -> Yhats reshaped to (1, -1). ---
    yhat_single = jax.random.normal(kYh1, (y_dim,), jnp.float32)
    out1 = egl_weighted_mse_forward(3, yhat_single, X, Y, params, min_val)
    out1 = jax.block_until_ready(out1)
    ref1 = egl_weighted_mse_reference(3, yhat_single, X, Y, params, min_val)
    assert out1.shape == (1,), out1.shape
    assert jnp.allclose(out1, ref1, atol=2e-2, rtol=2e-2), (out1, ref1)

    print("KERNEL_OK")
</pallas_src>

<mosaic_0001>
module attributes {stable_mosaic.version = 11 : i64} {
  func.func @egl_wmse_kernel(%arg0: i32, %arg1: memref<8x16xf32, #tpu.memory_space<vmem>>, %arg2: memref<8x24xf32, #tpu.memory_space<vmem>>, %arg3: memref<8x24xf32, #tpu.memory_space<vmem>>, %arg4: memref<16x500xf32, #tpu.memory_space<vmem>>, %arg5: memref<1x500xf32, #tpu.memory_space<vmem>>, %arg6: memref<500x500xf32, #tpu.memory_space<vmem>>, %arg7: memref<1x500xf32, #tpu.memory_space<vmem>>, %arg8: memref<500x500xf32, #tpu.memory_space<vmem>>, %arg9: memref<1x500xf32, #tpu.memory_space<vmem>>, %arg10: memref<500x24xf32, #tpu.memory_space<vmem>>, %arg11: memref<1x24xf32, #tpu.memory_space<vmem>>, %arg12: memref<8x1xf32, #tpu.memory_space<vmem>>) attributes {dimension_semantics = [#tpu.dimension_semantics<parallel>], iteration_bounds = array<i64: 1>, scalar_prefetch = 0 : i64, scratch_operands = 0 : i64, tpu.core_type = #tpu.core_type<tc>, window_params = [{transform_indices = @transform_0, window_bounds = array<i64: 8, 16>}, {transform_indices = @transform_1, window_bounds = array<i64: 8, 24>}, {transform_indices = @transform_2, window_bounds = array<i64: 8, 24>}, {pipeline_mode = #tpu.pipeline_mode<synchronous>, transform_indices = @transform_3, window_bounds = array<i64: 16, 500>}, {pipeline_mode = #tpu.pipeline_mode<synchronous>, transform_indices = @transform_4, window_bounds = array<i64: 1, 500>}, {pipeline_mode = #tpu.pipeline_mode<synchronous>, transform_indices = @transform_5, window_bounds = array<i64: 500, 500>}, {pipeline_mode = #tpu.pipeline_mode<synchronous>, transform_indices = @transform_6, window_bounds = array<i64: 1, 500>}, {pipeline_mode = #tpu.pipeline_mode<synchronous>, transform_indices = @transform_7, window_bounds = array<i64: 500, 500>}, {pipeline_mode = #tpu.pipeline_mode<synchronous>, transform_indices = @transform_8, window_bounds = array<i64: 1, 500>}, {pipeline_mode = #tpu.pipeline_mode<synchronous>, transform_indices = @transform_9, window_bounds = array<i64: 500, 24>}, {pipeline_mode = #tpu.pipeline_mode<synchronous>, transform_indices = @transform_10, window_bounds = array<i64: 1, 24>}, {transform_indices = @transform_11, window_bounds = array<i64: 8, 1>}]} {
    %c0 = arith.constant 0 : index
    %c0_0 = arith.constant 0 : index
    %0 = vector.load %arg1[%c0, %c0_0] : memref<8x16xf32, #tpu.memory_space<vmem>>, vector<8x16xf32>
    %c0_1 = arith.constant 0 : index
    %c0_2 = arith.constant 0 : index
    %1 = vector.load %arg4[%c0_1, %c0_2] : memref<16x500xf32, #tpu.memory_space<vmem>>, vector<16x500xf32>
    %cst = arith.constant dense<0.000000e+00> : vector<8x500xf32>
    %2 = tpu.matmul %0, %1, %cst {dimension_numbers = #tpu.dot_dimension_numbers<[1], [0], [0], [1], [0, 0, 1, 1], [], []>} : vector<8x16xf32>, vector<16x500xf32>, vector<8x500xf32> -> vector<8x500xf32>
    %c0_3 = arith.constant 0 : index
    %c0_4 = arith.constant 0 : index
    %3 = vector.load %arg5[%c0_3, %c0_4] : memref<1x500xf32, #tpu.memory_space<vmem>>, vector<1x500xf32>
    %4 = vector.broadcast %3 : vector<1x500xf32> to vector<8x500xf32>
    %5 = arith.addf %2, %4 : vector<8x500xf32>
    %cst_5 = arith.constant 0.000000e+00 : f32
    %6 = vector.broadcast %cst_5 : f32 to vector<8x500xf32>
    %7 = arith.maximumf %5, %6 : vector<8x500xf32>
    %c0_6 = arith.constant 0 : index
    %c0_7 = arith.constant 0 : index
    %8 = vector.load %arg6[%c0_6, %c0_7] : memref<500x500xf32, #tpu.memory_space<vmem>>, vector<500x500xf32>
    %cst_8 = arith.constant dense<0.000000e+00> : vector<8x500xf32>
    %9 = tpu.matmul %7, %8, %cst_8 {dimension_numbers = #tpu.dot_dimension_numbers<[1], [0], [0], [1], [0, 0, 1, 1], [], []>} : vector<8x500xf32>, vector<500x500xf32>, vector<8x500xf32> -> vector<8x500xf32>
    %c0_9 = arith.constant 0 : index
    %c0_10 = arith.constant 0 : index
    %10 = vector.load %arg7[%c0_9, %c0_10] : memref<1x500xf32, #tpu.memory_space<vmem>>, vector<1x500xf32>
    %11 = vector.broadcast %10 : vector<1x500xf32> to vector<8x500xf32>
    %12 = arith.addf %9, %11 : vector<8x500xf32>
    %cst_11 = arith.constant 0.000000e+00 : f32
    %13 = vector.broadcast %cst_11 : f32 to vector<8x500xf32>
    %14 = arith.maximumf %12, %13 : vector<8x500xf32>
    %c0_12 = arith.constant 0 : index
    %c0_13 = arith.constant 0 : index
    %15 = vector.load %arg8[%c0_12, %c0_13] : memref<500x500xf32, #tpu.memory_space<vmem>>, vector<500x500xf32>
    %cst_14 = arith.constant dense<0.000000e+00> : vector<8x500xf32>
    %16 = tpu.matmul %14, %15, %cst_14 {dimension_numbers = #tpu.dot_dimension_numbers<[1], [0], [0], [1], [0, 0, 1, 1], [], []>} : vector<8x500xf32>, vector<500x500xf32>, vector<8x500xf32> -> vector<8x500xf32>
    %c0_15 = arith.constant 0 : index
    %c0_16 = arith.constant 0 : index
    %17 = vector.load %arg9[%c0_15, %c0_16] : memref<1x500xf32, #tpu.memory_space<vmem>>, vector<1x500xf32>
    %18 = vector.broadcast %17 : vector<1x500xf32> to vector<8x500xf32>
    %19 = arith.addf %16, %18 : vector<8x500xf32>
    %cst_17 = arith.constant 0.000000e+00 : f32
    %20 = vector.broadcast %cst_17 : f32 to vector<8x500xf32>
    %21 = arith.maximumf %19, %20 : vector<8x500xf32>
    %c0_18 = arith.constant 0 : index
    %c0_19 = arith.constant 0 : index
    %22 = vector.load %arg10[%c0_18, %c0_19] : memref<500x24xf32, #tpu.memory_space<vmem>>, vector<500x24xf32>
    %cst_20 = arith.constant dense<0.000000e+00> : vector<8x24xf32>
    %23 = tpu.matmul %21, %22, %cst_20 {dimension_numbers = #tpu.dot_dimension_numbers<[1], [0], [0], [1], [0, 0, 1, 1], [], []>} : vector<8x500xf32>, vector<500x24xf32>, vector<8x24xf32> -> vector<8x24xf32>
    %c0_21 = arith.constant 0 : index
    %c0_22 = arith.constant 0 : index
    %24 = vector.load %arg11[%c0_21, %c0_22] : memref<1x24xf32, #tpu.memory_space<vmem>>, vector<1x24xf32>
    %25 = vector.broadcast %24 : vector<1x24xf32> to vector<8x24xf32>
    %26 = arith.addf %23, %25 : vector<8x24xf32>
    %cst_23 = arith.constant 0.000000e+00 : f32
    %27 = vector.broadcast %cst_23 : f32 to vector<8x24xf32>
    %28 = arith.subf %27, %26 : vector<8x24xf32>
    %29 = math.exp %28 : vector<8x24xf32>
    %cst_24 = arith.constant 1.000000e+00 : f32
    %30 = vector.broadcast %cst_24 : f32 to vector<8x24xf32>
    %31 = arith.addf %30, %29 : vector<8x24xf32>
    %cst_25 = arith.constant 1.000000e+00 : f32
    %32 = vector.broadcast %cst_25 : f32 to vector<8x24xf32>
    %33 = arith.divf %32, %31 : vector<8x24xf32>
    %cst_26 = arith.constant 1.000000e-03 : f32
    %34 = vector.broadcast %cst_26 : f32 to vector<8x24xf32>
    %35 = arith.maximumf %33, %34 : vector<8x24xf32>
    %c0_27 = arith.constant 0 : index
    %c0_28 = arith.constant 0 : index
    %36 = vector.load %arg3[%c0_27, %c0_28] : memref<8x24xf32, #tpu.memory_space<vmem>>, vector<8x24xf32>
    %c0_29 = arith.constant 0 : index
    %c0_30 = arith.constant 0 : index
    %37 = vector.load %arg2[%c0_29, %c0_30] : memref<8x24xf32, #tpu.memory_space<vmem>>, vector<8x24xf32>
    %38 = arith.subf %36, %37 : vector<8x24xf32>
    %39 = arith.mulf %38, %38 : vector<8x24xf32>
    %40 = arith.mulf %39, %35 : vector<8x24xf32>
    %cst_31 = arith.constant dense<0.000000e+00> : vector<8xf32>
    %41 = vector.multi_reduction <add>, %40, %cst_31 [1] : vector<8x24xf32> to vector<8xf32>
    %42 = vector.shape_cast %41 : vector<8xf32> to vector<8x1xf32>
    %cst_32 = arith.constant 2.400000e+01 : f32
    %43 = vector.broadcast %cst_32 : f32 to vector<8x1xf32>
    %44 = arith.divf %42, %43 : vector<8x1xf32>
    %c0_33 = arith.constant 0 : index
    %c0_34 = arith.constant 0 : index
    %45 = vector.load %arg12[%c0_33, %c0_34] : memref<8x1xf32, #tpu.memory_space<vmem>>, vector<8x1xf32>
    tpu.vector_store %arg12[%c0_33, %c0_34], %44 {strides = array<i32>} : memref<8x1xf32, #tpu.memory_space<vmem>>, vector<8x1xf32>,
    return
  }
  func.func @transform_0(%arg0: i32) -> (i32, i32) {
    %c0_i32 = arith.constant 0 : i32
    %c0_i32_0 = arith.constant 0 : i32
    return %arg0, %c0_i32 : i32, i32
  }
  func.func @transform_1(%arg0: i32) -> (i32, i32) {
    %c0_i32 = arith.constant 0 : i32
    %c0_i32_0 = arith.constant 0 : i32
    return %arg0, %c0_i32 : i32, i32
  }
  func.func @transform_2(%arg0: i32) -> (i32, i32) {
    %c0_i32 = arith.constant 0 : i32
    %c0_i32_0 = arith.constant 0 : i32
    return %arg0, %c0_i32 : i32, i32
  }
  func.func @transform_3(%arg0: i32) -> (i32, i32) {
    %c0_i32 = arith.constant 0 : i32
    %c0_i32_0 = arith.constant 0 : i32
    %c0_i32_1 = arith.constant 0 : i32
    return %c0_i32, %c0_i32_0 : i32, i32
  }
  func.func @transform_4(%arg0: i32) -> (i32, i32) {
    %c0_i32 = arith.constant 0 : i32
    %c0_i32_0 = arith.constant 0 : i32
    %c0_i32_1 = arith.constant 0 : i32
    return %c0_i32, %c0_i32_0 : i32, i32
  }
  func.func @transform_5(%arg0: i32) -> (i32, i32) {
    %c0_i32 = arith.constant 0 : i32
    %c0_i32_0 = arith.constant 0 : i32
    %c0_i32_1 = arith.constant 0 : i32
    return %c0_i32, %c0_i32_0 : i32, i32
  }
  func.func @transform_6(%arg0: i32) -> (i32, i32) {
    %c0_i32 = arith.constant 0 : i32
    %c0_i32_0 = arith.constant 0 : i32
    %c0_i32_1 = arith.constant 0 : i32
    return %c0_i32, %c0_i32_0 : i32, i32
  }
  func.func @transform_7(%arg0: i32) -> (i32, i32) {
    %c0_i32 = arith.constant 0 : i32
    %c0_i32_0 = arith.constant 0 : i32
    %c0_i32_1 = arith.constant 0 : i32
    return %c0_i32, %c0_i32_0 : i32, i32
  }
  func.func @transform_8(%arg0: i32) -> (i32, i32) {
    %c0_i32 = arith.constant 0 : i32
    %c0_i32_0 = arith.constant 0 : i32
    %c0_i32_1 = arith.constant 0 : i32
    return %c0_i32, %c0_i32_0 : i32, i32
  }
  func.func @transform_9(%arg0: i32) -> (i32, i32) {
    %c0_i32 = arith.constant 0 : i32
    %c0_i32_0 = arith.constant 0 : i32
    %c0_i32_1 = arith.constant 0 : i32
    return %c0_i32, %c0_i32_0 : i32, i32
  }
  func.func @transform_10(%arg0: i32) -> (i32, i32) {
    %c0_i32 = arith.constant 0 : i32
    %c0_i32_0 = arith.constant 0 : i32
    %c0_i32_1 = arith.constant 0 : i32
    return %c0_i32, %c0_i32_0 : i32, i32
  }
  func.func @transform_11(%arg0: i32) -> (i32, i32) {
    %c0_i32 = arith.constant 0 : i32
    %c0_i32_0 = arith.constant 0 : i32
    return %arg0, %c0_i32 : i32, i32
  }
}

</mosaic_0001>

<bundles_post_ra>
// kernel: tpu_custom_call.1
= control target key start
LH: loop header
LB: loop body
LE: loop exit
PB: predicated region body
PF: predicated region fallthrough
CT: control target
= control target key end

     0   :  { %16 = vsyncpa [#allocation3], 0  ;;  %s2045_s0 = inlined_call_operand.vmem [shape: f32[8,16], index: 0, kind: input, shape index: {}]   ;;  %s2046_s1 = inlined_call_operand.vmem [shape: f32[8,24], index: 1, kind: input, shape index: {}]   ;;  %s2047_s2 = inlined_call_operand.vmem [shape: f32[8,24], index: 2, kind: input, shape index: {}]   ;;  %s2048_s3 = inlined_call_operand.vmem [shape: f32[16,500], index: 3, kind: input, shape index: {}]   ;;  %s2049_s4 = inlined_call_operand.vmem [shape: f32[1,500], index: 4, kind: input, shape index: {}]   ;;  %s2050_s5 = inlined_call_operand.hbm [shape: f32[500,500], index: 5, kind: input, shape index: {}]   ;;  %s2051_s6 = inlined_call_operand.vmem [shape: f32[1,500], index: 6, kind: input, shape index: {}]   ;;  %s2052_s7 = inlined_call_operand.hbm [shape: f32[500,500], index: 7, kind: input, shape index: {}]   ;;  %s2053_s8 = inlined_call_operand.vmem [shape: f32[1,500], index: 8, kind: input, shape index: {}]   ;;  %s2054_s9 = inlined_call_operand.vmem [shape: f32[500,24], index: 9, kind: input, shape index: {}]   ;;  %s2055_s10 = inlined_call_operand.vmem [shape: f32[1,24], index: 10, kind: input, shape index: {}]   ;;  %s2056_s11 = inlined_call_operand.vmem [shape: f32[8,1], index: 11, kind: output, shape index: {}]  }
   0x1   :  { %s32_s19 = sshll.u32 %s2050_s5, 4  ;;  %s33_s19 = int_to_ptr.hbm [resolvable:$true] %s32_s19 }
   0x2   :  { %17 = vsyncpa [#allocation5], 0  ;;  %s1665_s20 = smov [#allocation2]   ;;  %s47_s24 = sshll.u32 %s2052_s7, 4  ;;  %s48_s24 = int_to_ptr.hbm [resolvable:$true] %s47_s24 }
   0x3   :  { %s34_s21 = sshll.u32 %s1665_s20, 4  ;;  %s1666_s25 = smov 512   ;;  %s35_s21 = int_to_ptr.vmem [resolvable:$true] %s34_s21 }
   0x4   :  { %s1667_s26 = smov 32   ;;  %s1668_s27 = smov [#allocation4]  }
   0x5   :  { %40 = dma.hbm_to_vmem [thread:$0]  %s33_s19, 32256, %s35_s21, [#allocation3], %s1666_s25, %s1666_s25, %s1667_s26  }
   0x6   :  { %s49_s28 = sshll.u32 %s1668_s27, 4  ;;  %s50_s28 = int_to_ptr.vmem [resolvable:$true] %s49_s28 }
   0x7   :  { %55 = dma.hbm_to_vmem [thread:$0]  %s48_s24, 32256, %s50_s28, [#allocation5], %s1666_s25, %s1666_s25, %s1667_s26  }
   0x8   :  { %1661 = dma.done.wait [#allocation3], 32256  }
   0x9   :  { %1662 = vsyncadd [#allocation3], 4294935040 }
   0xa   :  { %1663 = dma.done.wait [#allocation5], 32256  }
   0xb   :  { %1664 = vsyncadd [#allocation5], 4294935040  ;;  %v75_v0 = vld [vmem:[%s2048_s3 + $0x20] sm:$0xff]  ;;  %v76_v1 = vld [vmem:[%s2048_s3 + $0x28] sm:$0xff]  ;;  %vm89_vm0 = vcmask 130048   ;;  %vm443_vm1 = vcmask 1043456  }
   0xc   :  { %v77_v2 = vld [vmem:[%s2048_s3 + $0x30] sm:$0xff]  ;;  %107 = vmatpush.msra.mxu0 %v75_v0  ;;  %127 = vmatpush.msra.mxu1 %v76_v1  ;;  %v78_v3 = vld [vmem:[%s2048_s3 + $0x38] sm:$0xff]  ;;  %v71_v4 = vld [vmem:[%s2048_s3] sm:$0xff]  ;;  %vm439_vm2 = vcmask 949248   ;;  %vm1559_vm7 = vcmask 195584   ;;  %vm1571_vm9 = vcmask 7168  }
   0xd   :  { %v72_v5 = vld [vmem:[%s2048_s3 + $0x8] sm:$0xff]  ;;  %147 = vmatpush.msra.mxu2 %v77_v2  ;;  %167 = vmatpush.msra.mxu3 %v78_v3  ;;  %v73_v6 = vld [vmem:[%s2048_s3 + $0x10] sm:$0xff]  ;;  %v74_v7 = vld [vmem:[%s2048_s3 + $0x18] sm:$0xff] }
   0xe   :  { %v70_v8 = vld [vmem:[%s2045_s0] sm:$0xff]  ;;  %108 = vmatpush.msra.mxu0 %v71_v4  ;;  %128 = vmatpush.msra.mxu1 %v72_v5 }
   0xf   :  { %148 = vmatpush.msra.mxu2 %v73_v6  ;;  %168 = vmatpush.msra.mxu3 %v74_v7  ;;  %v237_v9 = vld [vmem:[#allocation2 + $0x1e0] sm:$0xff]  ;;  %v302_v7 = vld [vmem:[#allocation2 + $0x3e8] sm:$0xff] }
  0x10   :  { %v301_v10 = vld [vmem:[#allocation2 + $0x3e0] sm:$0xff]  ;;  %1579 = vmatmul.msk.f32.vlgmr.msra.gmra.mxu0 %vm89_vm0, %v70_v8  ;;  %1580 = vmatmul.msk.f32.vlgmr.msra.gmra.mxu1 %vm89_vm0, %v70_v8 }
  0x11   :  { %v233_v11 = vld [vmem:[#allocation2 + $0x1c0] sm:$0xff]  ;;  %1581 = vmatmul.msk.f32.vlgmr.msra.gmra.mxu2 %vm89_vm0, %v70_v8  ;;  %1582 = vmatmul.msk.f32.vlgmr.msra.gmra.mxu3 %vm89_vm0, %v70_v8  ;;  %v366_v8 = vld [vmem:[#allocation2 + $0x5e8] sm:$0xff] }
  0x12   :  { %v297_v12 = vld [vmem:[#allocation2 + $0x3c0] sm:$0xff]  ;;  %456 = vmatpush.msrb.mxu0 %v237_v9  ;;  %476 = vmatpush.msrb.mxu1 %v301_v10  ;;  %v238_v9 = vld [vmem:[#allocation2 + $0x1e8] sm:$0xff] }
  0x13   :  { %v365_v13 = vld [vmem:[#allocation2 + $0x5e0] sm:$0xff] }
  0x14   :  { %v425_v14 = vld [vmem:[#allocation2 + $0x7c0] sm:$0xf]  ;;  %496 = vmatpush.msrb.mxu2 %v365_v13  ;;  %457 = vmatpush.msrb.mxu0 %v233_v11  ;;  %v298_v11 = vld [vmem:[#allocation2 + $0x3c8] sm:$0xff] }
  0x15   :  { %v361_v15 = vld [vmem:[#allocation2 + $0x5c0] sm:$0xff]  ;;  %1583 = vmatpush.msk.msrb.mxu3 %vm443_vm1, %v425_v14  ;;  %477 = vmatpush.msrb.mxu1 %v297_v12  ;;  %v362_v12 = vld [vmem:[#allocation2 + $0x5c8] sm:$0xff] }
  0x16   :  { %v229_v16 = vld [vmem:[#allocation2 + $0x1a0] sm:$0xff]  ;;  %497 = vmatpush.msrb.mxu2 %v361_v15  ;;  %v234_v13 = vld [vmem:[#allocation2 + $0x1c8] sm:$0xff] }
  0x17   :  { %v293_v17 = vld [vmem:[#allocation2 + $0x3a0] sm:$0xff]  ;;  %458 = vmatpush.msrb.mxu0 %v229_v16  ;;  %v426_v14 = vld [vmem:[#allocation2 + $0x7c8] sm:$0xf] }
  0x18   :  { %v421_v18 = vld [vmem:[#allocation2 + $0x7a0] sm:$0xff]  ;;  %478 = vmatpush.msrb.mxu1 %v293_v17  ;;  %v294_v15 = vld [vmem:[#allocation2 + $0x3a8] sm:$0xff] }
  0x19   :  { %v357_v19 = vld [vmem:[#allocation2 + $0x5a0] sm:$0xff]  ;;  %518 = vmatpush.msrb.mxu3 %v421_v18  ;;  %v358_v16 = vld [vmem:[#allocation2 + $0x5a8] sm:$0xff] }
  0x1a   :  { %v417_v20 = vld [vmem:[#allocation2 + $0x780] sm:$0xff]  ;;  %498 = vmatpush.msrb.mxu2 %v357_v19  ;;  %v230_v17 = vld [vmem:[#allocation2 + $0x1a8] sm:$0xff] }
  0x1b   :  { %v225_v21 = vld [vmem:[#allocation2 + $0x180] sm:$0xff]  ;;  %519 = vmatpush.msrb.mxu3 %v417_v20  ;;  %v422_v18 = vld [vmem:[#allocation2 + $0x7a8] sm:$0xff] }
  0x1c   :  { %v289_v22 = vld [vmem:[#allocation2 + $0x380] sm:$0xff]  ;;  %459 = vmatpush.msrb.mxu0 %v225_v21  ;;  %v290_v19 = vld [vmem:[#allocation2 + $0x388] sm:$0xff] }
  0x1d   :  { %v353_v23 = vld [vmem:[#allocation2 + $0x580] sm:$0xff]  ;;  %479 = vmatpush.msrb.mxu1 %v289_v22  ;;  %v354_v20 = vld [vmem:[#allocation2 + $0x588] sm:$0xff] }
  0x1e   :  { %v413_v24 = vld [vmem:[#allocation2 + $0x760] sm:$0xff]  ;;  %499 = vmatpush.msrb.mxu2 %v353_v23  ;;  %v226_v21 = vld [vmem:[#allocation2 + $0x188] sm:$0xff] }
  0x1f   :  { %v221_v25 = vld [vmem:[#allocation2 + $0x160] sm:$0xff]  ;;  %520 = vmatpush.msrb.mxu3 %v413_v24  ;;  %v418_v22 = vld [vmem:[#allocation2 + $0x788] sm:$0xff] }
  0x20   :  { %v285_v26 = vld [vmem:[#allocation2 + $0x360] sm:$0xff]  ;;  %460 = vmatpush.msrb.mxu0 %v221_v25  ;;  %v286_v23 = vld [vmem:[#allocation2 + $0x368] sm:$0xff] }
  0x21   :  { %v349_v27 = vld [vmem:[#allocation2 + $0x560] sm:$0xff]  ;;  %480 = vmatpush.msrb.mxu1 %v285_v26  ;;  %v350_v24 = vld [vmem:[#allocation2 + $0x568] sm:$0xff] }
  0x22   :  { %v409_v28 = vld [vmem:[#allocation2 + $0x740] sm:$0xff]  ;;  %500 = vmatpush.msrb.mxu2 %v349_v27  ;;  %v222_v25 = vld [vmem:[#allocation2 + $0x168] sm:$0xff] }
  0x23   :  { %v217_v29 = vld [vmem:[#allocation2 + $0x140] sm:$0xff]  ;;  %521 = vmatpush.msrb.mxu3 %v409_v28  ;;  %v414_v26 = vld [vmem:[#allocation2 + $0x768] sm:$0xff] }
  0x24   :  { %v281_v30 = vld [vmem:[#allocation2 + $0x340] sm:$0xff]  ;;  %461 = vmatpush.msrb.mxu0 %v217_v29  ;;  %v282_v27 = vld [vmem:[#allocation2 + $0x348] sm:$0xff] }
  0x25   :  { %v345_v31 = vld [vmem:[#allocation2 + $0x540] sm:$0xff]  ;;  %481 = vmatpush.msrb.mxu1 %v281_v30  ;;  %v346_v28 = vld [vmem:[#allocation2 + $0x548] sm:$0xff] }
  0x26   :  { %v405_v32 = vld [vmem:[#allocation2 + $0x720] sm:$0xff]  ;;  %501 = vmatpush.msrb.mxu2 %v345_v31  ;;  %v218_v29 = vld [vmem:[#allocation2 + $0x148] sm:$0xff] }
  0x27   :  { %v213_v33 = vld [vmem:[#allocation2 + $0x120] sm:$0xff]  ;;  %522 = vmatpush.msrb.mxu3 %v405_v32  ;;  %v410_v30 = vld [vmem:[#allocation2 + $0x748] sm:$0xff] }
  0x28   :  { %v277_v34 = vld [vmem:[#allocation2 + $0x320] sm:$0xff]  ;;  %462 = vmatpush.msrb.mxu0 %v213_v33  ;;  %v278_v31 = vld [vmem:[#allocation2 + $0x328] sm:$0xff] }
  0x29   :  { %v341_v35 = vld [vmem:[#allocation2 + $0x520] sm:$0xff]  ;;  %482 = vmatpush.msrb.mxu1 %v277_v34  ;;  %v342_v32 = vld [vmem:[#allocation2 + $0x528] sm:$0xff] }
  0x2a   :  { %v401_v36 = vld [vmem:[#allocation2 + $0x700] sm:$0xff]  ;;  %502 = vmatpush.msrb.mxu2 %v341_v35  ;;  %v214_v33 = vld [vmem:[#allocation2 + $0x128] sm:$0xff] }
  0x2b   :  { %v209_v37 = vld [vmem:[#allocation2 + $0x100] sm:$0xff]  ;;  %523 = vmatpush.msrb.mxu3 %v401_v36  ;;  %v406_v34 = vld [vmem:[#allocation2 + $0x728] sm:$0xff] }
  0x2c   :  { %v273_v38 = vld [vmem:[#allocation2 + $0x300] sm:$0xff]  ;;  %463 = vmatpush.msrb.mxu0 %v209_v37  ;;  %v274_v35 = vld [vmem:[#allocation2 + $0x308] sm:$0xff] }
  0x2d   :  { %v337_v39 = vld [vmem:[#allocation2 + $0x500] sm:$0xff]  ;;  %483 = vmatpush.msrb.mxu1 %v273_v38  ;;  %v338_v36 = vld [vmem:[#allocation2 + $0x508] sm:$0xff] }
  0x2e   :  { %v397_v40 = vld [vmem:[#allocation2 + $0x6e0] sm:$0xff]  ;;  %503 = vmatpush.msrb.mxu2 %v337_v39  ;;  %v210_v37 = vld [vmem:[#allocation2 + $0x108] sm:$0xff] }
  0x2f   :  { %v205_v41 = vld [vmem:[#allocation2 + $0xe0] sm:$0xff]  ;;  %524 = vmatpush.msrb.mxu3 %v397_v40  ;;  %v402_v38 = vld [vmem:[#allocation2 + $0x708] sm:$0xff] }
  0x30   :  { %v269_v42 = vld [vmem:[#allocation2 + $0x2e0] sm:$0xff]  ;;  %464 = vmatpush.msrb.mxu0 %v205_v41  ;;  %v270_v39 = vld [vmem:[#allocation2 + $0x2e8] sm:$0xff] }
  0x31   :  { %v333_v43 = vld [vmem:[#allocation2 + $0x4e0] sm:$0xff]  ;;  %484 = vmatpush.msrb.mxu1 %v269_v42  ;;  %v334_v40 = vld [vmem:[#allocation2 + $0x4e8] sm:$0xff] }
  0x32   :  { %v393_v44 = vld [vmem:[#allocation2 + $0x6c0] sm:$0xff]  ;;  %504 = vmatpush.msrb.mxu2 %v333_v43  ;;  %v206_v41 = vld [vmem:[#allocation2 + $0xe8] sm:$0xff] }
  0x33   :  { %v201_v45 = vld [vmem:[#allocation2 + $0xc0] sm:$0xff]  ;;  %525 = vmatpush.msrb.mxu3 %v393_v44  ;;  %v398_v42 = vld [vmem:[#allocation2 + $0x6e8] sm:$0xff] }
  0x34   :  { %v265_v46 = vld [vmem:[#allocation2 + $0x2c0] sm:$0xff]  ;;  %465 = vmatpush.msrb.mxu0 %v201_v45  ;;  %v266_v43 = vld [vmem:[#allocation2 + $0x2c8] sm:$0xff] }
  0x35   :  { %v329_v47 = vld [vmem:[#allocation2 + $0x4c0] sm:$0xff]  ;;  %485 = vmatpush.msrb.mxu1 %v265_v46  ;;  %v330_v44 = vld [vmem:[#allocation2 + $0x4c8] sm:$0xff] }
  0x36   :  { %v389_v48 = vld [vmem:[#allocation2 + $0x6a0] sm:$0xff]  ;;  %505 = vmatpush.msrb.mxu2 %v329_v47  ;;  %v202_v45 = vld [vmem:[#allocation2 + $0xc8] sm:$0xff] }
  0x37   :  { %v197_v49 = vld [vmem:[#allocation2 + $0xa0] sm:$0xff]  ;;  %526 = vmatpush.msrb.mxu3 %v389_v48  ;;  %v394_v46 = vld [vmem:[#allocation2 + $0x6c8] sm:$0xff] }
  0x38   :  { %v261_v50 = vld [vmem:[#allocation2 + $0x2a0] sm:$0xff]  ;;  %466 = vmatpush.msrb.mxu0 %v197_v49  ;;  %v262_v47 = vld [vmem:[#allocation2 + $0x2a8] sm:$0xff] }
  0x39   :  { %v325_v51 = vld [vmem:[#allocation2 + $0x4a0] sm:$0xff]  ;;  %486 = vmatpush.msrb.mxu1 %v261_v50  ;;  %v326_v48 = vld [vmem:[#allocation2 + $0x4a8] sm:$0xff] }
  0x3a   :  { %v385_v52 = vld [vmem:[#allocation2 + $0x680] sm:$0xff]  ;;  %506 = vmatpush.msrb.mxu2 %v325_v51  ;;  %v258_v49 = vld [vmem:[#allocation2 + $0x288] sm:$0xff] }
  0x3b   :  { %v193_v53 = vld [vmem:[#allocation2 + $0x80] sm:$0xff]  ;;  %527 = vmatpush.msrb.mxu3 %v385_v52  ;;  %v322_v50 = vld [vmem:[#allocation2 + $0x488] sm:$0xff] }
  0x3c   :  { %v257_v54 = vld [vmem:[#allocation2 + $0x280] sm:$0xff]  ;;  %467 = vmatpush.msrb.mxu0 %v193_v53  ;;  %v254_v51 = vld [vmem:[#allocation2 + $0x268] sm:$0xff] }
  0x3d   :  { %v321_v55 = vld [vmem:[#allocation2 + $0x480] sm:$0xff]  ;;  %487 = vmatpush.msrb.mxu1 %v257_v54  ;;  %v318_v52 = vld [vmem:[#allocation2 + $0x468] sm:$0xff] }
  0x3e   :  { %v381_v56 = vld [vmem:[#allocation2 + $0x660] sm:$0xff]  ;;  %507 = vmatpush.msrb.mxu2 %v321_v55  ;;  %v198_v53 = vld [vmem:[#allocation2 + $0xa8] sm:$0xff] }
  0x3f   :  { %v189_v57 = vld [vmem:[#allocation2 + $0x60] sm:$0xff]  ;;  %528 = vmatpush.msrb.mxu3 %v381_v56  ;;  %v250_v54 = vld [vmem:[#allocation2 + $0x248] sm:$0xff] }
  0x40   :  { %v253_v58 = vld [vmem:[#allocation2 + $0x260] sm:$0xff]  ;;  %468 = vmatpush.msrb.mxu0 %v189_v57  ;;  %v314_v55 = vld [vmem:[#allocation2 + $0x448] sm:$0xff] }
  0x41   :  { %v317_v59 = vld [vmem:[#allocation2 + $0x460] sm:$0xff]  ;;  %488 = vmatpush.msrb.mxu1 %v253_v58  ;;  %v390_v56 = vld [vmem:[#allocation2 + $0x6a8] sm:$0xff] }
  0x42   :  { %v377_v60 = vld [vmem:[#allocation2 + $0x640] sm:$0xff]  ;;  %508 = vmatpush.msrb.mxu2 %v317_v59  ;;  %v194_v57 = vld [vmem:[#allocation2 + $0x88] sm:$0xff] }
  0x43   :  { %v185_v61 = vld [vmem:[#allocation2 + $0x40] sm:$0xff]  ;;  %529 = vmatpush.msrb.mxu3 %v377_v60  ;;  %v246_v58 = vld [vmem:[#allocation2 + $0x228] sm:$0xff] }
  0x44   :  { %v249_v62 = vld [vmem:[#allocation2 + $0x240] sm:$0xff]  ;;  %469 = vmatpush.msrb.mxu0 %v185_v61  ;;  %v310_v59 = vld [vmem:[#allocation2 + $0x428] sm:$0xff] }
  0x45   :  { %v313_v63 = vld [vmem:[#allocation2 + $0x440] sm:$0xff]  ;;  %489 = vmatpush.msrb.mxu1 %v249_v62  ;;  %v386_v60 = vld [vmem:[#allocation2 + $0x688] sm:$0xff] }
  0x46   :  { %v373_v0 = vld [vmem:[#allocation2 + $0x620] sm:$0xff]  ;;  %509 = vmatpush.msrb.mxu2 %v313_v63  ;;  %v190_v61 = vld [vmem:[#allocation2 + $0x68] sm:$0xff] }
  0x47   :  { %v181_v1 = vld [vmem:[#allocation2 + $0x20] sm:$0xff]  ;;  %530 = vmatpush.msrb.mxu3 %v373_v0  ;;  %v242_v62 = vld [vmem:[#allocation2 + $0x208] sm:$0xff] }
  0x48   :  { %v245_v2 = vld [vmem:[#allocation2 + $0x220] sm:$0xff]  ;;  %470 = vmatpush.msrb.mxu0 %v181_v1  ;;  %v306_v63 = vld [vmem:[#allocation2 + $0x408] sm:$0xff] }
  0x49   :  { %v309_v3 = vld [vmem:[#allocation2 + $0x420] sm:$0xff]  ;;  %490 = vmatpush.msrb.mxu1 %v245_v2  ;;  %v382_v0 = vld [vmem:[#allocation2 + $0x668] sm:$0xff] }
  0x4a   :  { %v369_v4 = vld [vmem:[#allocation2 + $0x600] sm:$0xff]  ;;  %510 = vmatpush.msrb.mxu2 %v309_v3  ;;  %v186_v1 = vld [vmem:[#allocation2 + $0x48] sm:$0xff] }
  0x4b   :  { %v177_v5 = vld [vmem:[#allocation2] sm:$0xff]  ;;  %531 = vmatpush.msrb.mxu3 %v369_v4  ;;  %v378_v2 = vld [vmem:[#allocation2 + $0x648] sm:$0xff] }
  0x4c   :  { %v241_v6 = vld [vmem:[#allocation2 + $0x200] sm:$0xff]  ;;  %471 = vmatpush.msrb.mxu0 %v177_v5  ;;  %v182_v3 = vld [vmem:[#allocation2 + $0x28] sm:$0xff] }
  0x4d   :  { %v305_v10 = vld [vmem:[#allocation2 + $0x400] sm:$0xff]  ;;  %491 = vmatpush.msrb.mxu1 %v241_v6  ;;  %536 = vmatpush.msra.mxu3 %v238_v9  ;;  %v374_v4 = vld [vmem:[#allocation2 + $0x628] sm:$0xff] }
  0x4e   :  { %556 = vmatpush.msra.mxu0 %v302_v7  ;;  %511 = vmatpush.msrb.mxu2 %v305_v10  ;;  %v178_v5 = vld [vmem:[#allocation2 + $0x8] sm:$0xff]  ;;  %v79_v7 = vld [vmem:[%s2049_s4] sm:$0xf] }
  0x4f   :  { %576 = vmatpush.msra.mxu1 %v366_v8  ;;  %537 = vmatpush.msra.mxu3 %v234_v13  ;;  %v370_v6 = vld [vmem:[#allocation2 + $0x608] sm:$0xff]  ;;  %v81_v8 = vperm.slane %v79_v7, 0  ;;  %v82_v9 = vperm.slane %v79_v7, 1 }
  0x50   :  { %557 = vmatpush.msra.mxu0 %v298_v11  ;;  %1585 = vmatpush.msk.msra.mxu2 %vm443_vm1, %v426_v14 }
  0x51   :  { %577 = vmatpush.msra.mxu1 %v362_v12  ;;  %538 = vmatpush.msra.mxu3 %v230_v17  ;;  %v427_v17 = vld [vmem:[#allocation2 + $0x7d0] sm:$0xf] }
  0x52   :  { %558 = vmatpush.msra.mxu0 %v294_v15  ;;  %598 = vmatpush.msra.mxu2 %v422_v18  ;;  %v83_v18 = vperm.slane %v79_v7, 2 }
  0x53   :  { %578 = vmatpush.msra.mxu1 %v358_v16  ;;  %539 = vmatpush.msra.mxu3 %v226_v21  ;;  %v367_v16 = vld [vmem:[#allocation2 + $0x5f0] sm:$0xff] }
  0x54   :  { %559 = vmatpush.msra.mxu0 %v290_v19  ;;  %599 = vmatpush.msra.mxu2 %v418_v22  ;;  %v84_v19 = vperm.slane %v79_v7, 3  ;;  %v423_v21 = vld [vmem:[#allocation2 + $0x7b0] sm:$0xff] }
  0x55   :  { %579 = vmatpush.msra.mxu1 %v354_v20  ;;  %540 = vmatpush.msra.mxu3 %v222_v25  ;;  %v363_v20 = vld [vmem:[#allocation2 + $0x5d0] sm:$0xff] }
  0x56   :  { %560 = vmatpush.msra.mxu0 %v286_v23  ;;  %600 = vmatpush.msra.mxu2 %v414_v26  ;;  %v419_v25 = vld [vmem:[#allocation2 + $0x790] sm:$0xff] }
  0x57   :  { %580 = vmatpush.msra.mxu1 %v350_v24  ;;  %541 = vmatpush.msra.mxu3 %v218_v29  ;;  %v359_v24 = vld [vmem:[#allocation2 + $0x5b0] sm:$0xff] }
  0x58   :  { %561 = vmatpush.msra.mxu0 %v282_v27  ;;  %601 = vmatpush.msra.mxu2 %v410_v30  ;;  %v239_v30 = vld [vmem:[#allocation2 + $0x1f0] sm:$0xff] }
  0x59   :  { %581 = vmatpush.msra.mxu1 %v346_v28  ;;  %542 = vmatpush.msra.mxu3 %v214_v33  ;;  %v415_v33 = vld [vmem:[#allocation2 + $0x770] sm:$0xff] }
  0x5a   :  { %562 = vmatpush.msra.mxu0 %v278_v31  ;;  %602 = vmatpush.msra.mxu2 %v406_v34  ;;  %v303_v31 = vld [vmem:[#allocation2 + $0x3f0] sm:$0xff] }
  0x5b   :  { %582 = vmatpush.msra.mxu1 %v342_v32  ;;  %543 = vmatpush.msra.mxu3 %v210_v37  ;;  %v355_v32 = vld [vmem:[#allocation2 + $0x590] sm:$0xff] }
  0x5c   :  { %563 = vmatpush.msra.mxu0 %v274_v35  ;;  %603 = vmatpush.msra.mxu2 %v402_v38  ;;  %v235_v34 = vld [vmem:[#allocation2 + $0x1d0] sm:$0xff] }
  0x5d   :  { %583 = vmatpush.msra.mxu1 %v338_v36  ;;  %544 = vmatpush.msra.mxu3 %v206_v41  ;;  %v299_v35 = vld [vmem:[#allocation2 + $0x3d0] sm:$0xff] }
  0x5e   :  { %564 = vmatpush.msra.mxu0 %v270_v39  ;;  %604 = vmatpush.msra.mxu2 %v398_v42  ;;  %v351_v36 = vld [vmem:[#allocation2 + $0x570] sm:$0xff] }
  0x5f   :  { %584 = vmatpush.msra.mxu1 %v334_v40  ;;  %545 = vmatpush.msra.mxu3 %v202_v45  ;;  %v411_v37 = vld [vmem:[#allocation2 + $0x750] sm:$0xff] }
  0x60   :  { %565 = vmatpush.msra.mxu0 %v266_v43  ;;  %605 = vmatpush.msra.mxu2 %v394_v46  ;;  %v231_v38 = vld [vmem:[#allocation2 + $0x1b0] sm:$0xff] }
  0x61   :  { %585 = vmatpush.msra.mxu1 %v330_v44  ;;  %546 = vmatpush.msra.mxu3 %v198_v53  ;;  %v295_v39 = vld [vmem:[#allocation2 + $0x3b0] sm:$0xff] }
  0x62   :  { %566 = vmatpush.msra.mxu0 %v262_v47  ;;  %606 = vmatpush.msra.mxu2 %v390_v56  ;;  %v347_v40 = vld [vmem:[#allocation2 + $0x550] sm:$0xff] }
  0x63   :  { %586 = vmatpush.msra.mxu1 %v326_v48  ;;  %547 = vmatpush.msra.mxu3 %v194_v57  ;;  %v407_v41 = vld [vmem:[#allocation2 + $0x730] sm:$0xff] }
  0x64   :  { %567 = vmatpush.msra.mxu0 %v258_v49  ;;  %607 = vmatpush.msra.mxu2 %v386_v60  ;;  %v227_v42 = vld [vmem:[#allocation2 + $0x190] sm:$0xff] }
  0x65   :  { %587 = vmatpush.msra.mxu1 %v322_v50  ;;  %548 = vmatpush.msra.mxu3 %v190_v61  ;;  %v291_v43 = vld [vmem:[#allocation2 + $0x390] sm:$0xff] }
  0x66   :  { %568 = vmatpush.msra.mxu0 %v254_v51  ;;  %608 = vmatpush.msra.mxu2 %v382_v0  ;;  %v343_v44 = vld [vmem:[#allocation2 + $0x530] sm:$0xff] }
  0x67   :  { %588 = vmatpush.msra.mxu1 %v318_v52  ;;  %549 = vmatpush.msra.mxu3 %v186_v1  ;;  %v403_v45 = vld [vmem:[#allocation2 + $0x710] sm:$0xff] }
  0x68   :  { %569 = vmatpush.msra.mxu0 %v250_v54  ;;  %609 = vmatpush.msra.mxu2 %v378_v2  ;;  %v223_v46 = vld [vmem:[#allocation2 + $0x170] sm:$0xff] }
  0x69   :  { %589 = vmatpush.msra.mxu1 %v314_v55  ;;  %550 = vmatpush.msra.mxu3 %v182_v3  ;;  %v287_v47 = vld [vmem:[#allocation2 + $0x370] sm:$0xff] }
  0x6a   :  { %570 = vmatpush.msra.mxu0 %v246_v58  ;;  %610 = vmatpush.msra.mxu2 %v374_v4  ;;  %v339_v48 = vld [vmem:[#allocation2 + $0x510] sm:$0xff] }
  0x6b   :  { %590 = vmatpush.msra.mxu1 %v310_v59  ;;  %551 = vmatpush.msra.mxu3 %v178_v5  ;;  %v399_v49 = vld [vmem:[#allocation2 + $0x6f0] sm:$0xff] }
  0x6c   :  { %571 = vmatpush.msra.mxu0 %v242_v62  ;;  %611 = vmatpush.msra.mxu2 %v370_v6  ;;  %v219_v50 = vld [vmem:[#allocation2 + $0x150] sm:$0xff] }
  0x6d   :  { %591 = vmatpush.msra.mxu1 %v306_v63  ;;  %v283_v51 = vld [vmem:[#allocation2 + $0x350] sm:$0xff] }
  0x6e   :  { %v335_v52 = vld [vmem:[#allocation2 + $0x4f0] sm:$0xff] }
  0x6f   :  { %v395_v53 = vld [vmem:[#allocation2 + $0x6d0] sm:$0xff] }
  0x70   :  { %v215_v54 = vld [vmem:[#allocation2 + $0x130] sm:$0xff] }
  0x71   :  { %v279_v55 = vld [vmem:[#allocation2 + $0x330] sm:$0xff] }
  0x72   :  { %v331_v56 = vld [vmem:[#allocation2 + $0x4d0] sm:$0xff] }
  0x73   :  { %v391_v57 = vld [vmem:[#allocation2 + $0x6b0] sm:$0xff] }
  0x74   :  { %v211_v58 = vld [vmem:[#allocation2 + $0x110] sm:$0xff] }
  0x75   :  { %v275_v59 = vld [vmem:[#allocation2 + $0x310] sm:$0xff] }
  0x76   :  { %v327_v60 = vld [vmem:[#allocation2 + $0x4b0] sm:$0xff] }
  0x77   :  { %v387_v61 = vld [vmem:[#allocation2 + $0x690] sm:$0xff] }
  0x78   :  { %v207_v62 = vld [vmem:[#allocation2 + $0xf0] sm:$0xff] }
  0x79   :  { %v271_v63 = vld [vmem:[#allocation2 + $0x2f0] sm:$0xff] }
  0x7a   :  { %v323_v0 = vld [vmem:[#allocation2 + $0x490] sm:$0xff] }
  0x7b   :  { %v383_v1 = vld [vmem:[#allocation2 + $0x670] sm:$0xff] }
  0x7c   :  { %v203_v2 = vld [vmem:[#allocation2 + $0xd0] sm:$0xff] }
  0x7d   :  { %v267_v3 = vld [vmem:[#allocation2 + $0x2d0] sm:$0xff] }
  0x7e   :  { %v319_v4 = vld [vmem:[#allocation2 + $0x470] sm:$0xff] }
  0x7f   :  { %v379_v5 = vld [vmem:[#allocation2 + $0x650] sm:$0xff] }
  0x80   :  { %v199_v6 = vld [vmem:[#allocation2 + $0xb0] sm:$0xff] }
  0x81   :  { %v263_v7 = vld [vmem:[#allocation2 + $0x2b0] sm:$0xff] }
  0x8d   :  { %v110_v10 = vpop.f32.mrf.mxu0  ;;  %v130_v11 = vpop.f32.mrf.mxu1 }
  0x8e   :  { %v111_v12 = vadd.f32 %v110_v10, %v81_v8  ;;  %v131_v13 = vadd.f32 %v130_v11, %v82_v9  ;;  %v315_v8 = vld [vmem:[#allocation2 + $0x450] sm:$0xff] }
  0x8f   :  { %v375_v9 = vld [vmem:[#allocation2 + $0x630] sm:$0xff] }
  0x90   :  { %v1768_v14 = vmax.f32 %v111_v12, 0.0  ;;  %v1770_v15 = vmax.f32 %v131_v13, 0.0  ;;  %v195_v10 = vld [vmem:[#allocation2 + $0x90] sm:$0xff] }
  0x91   :  { %v259_v11 = vld [vmem:[#allocation2 + $0x290] sm:$0xff] }
  0x92   :  { %472 = vmatmul.f32.vlgmr.msrb.gmra.mxu0 %v1768_v14  ;;  %492 = vmatmul.f32.vlgmr.msrb.gmra.mxu1 %v1770_v15  ;;  %v311_v12 = vld [vmem:[#allocation2 + $0x430] sm:$0xff] }
  0x93   :  { %656 = vmatpush.msrb.mxu0 %v367_v16  ;;  %1587 = vmatpush.msk.msrb.mxu1 %vm443_vm1, %v427_v17  ;;  %v371_v13 = vld [vmem:[#allocation2 + $0x610] sm:$0xff]  ;;  %v240_v17 = vld [vmem:[#allocation2 + $0x1f8] sm:$0xff] }
  0x94   :  { %v150_v22 = vpop.f32.mrf.mxu2  ;;  %v170_v23 = vpop.f32.mrf.mxu3  ;;  %v191_v16 = vld [vmem:[#allocation2 + $0x70] sm:$0xff] }
  0x95   :  { %v151_v26 = vadd.f32 %v150_v22, %v83_v18  ;;  %v171_v27 = vadd.f32 %v170_v23, %v84_v19  ;;  %657 = vmatpush.msrb.mxu0 %v363_v20  ;;  %678 = vmatpush.msrb.mxu1 %v423_v21  ;;  %v255_v18 = vld [vmem:[#allocation2 + $0x270] sm:$0xff]  ;;  %v236_v21 = vld [vmem:[#allocation2 + $0x1d8] sm:$0xff] }
  0x96   :  { %v307_v19 = vld [vmem:[#allocation2 + $0x410] sm:$0xff]  ;;  %v428_v22 = vld [vmem:[#allocation2 + $0x7d8] sm:$0xf] }
  0x97   :  { %v1775_v28 = vmax.f32 %v151_v26, 0.0  ;;  %v1777_v29 = vmax.f32 %v171_v27, 0.0  ;;  %658 = vmatpush.msrb.mxu0 %v359_v24  ;;  %679 = vmatpush.msrb.mxu1 %v419_v25  ;;  %v187_v20 = vld [vmem:[#allocation2 + $0x50] sm:$0xff]  ;;  %v232_v24 = vld [vmem:[#allocation2 + $0x1b8] sm:$0xff] }
  0x98   :  { %v251_v23 = vld [vmem:[#allocation2 + $0x250] sm:$0xff]  ;;  %v424_v26 = vld [vmem:[#allocation2 + $0x7b8] sm:$0xff] }
  0x99   :  { %512 = vmatmul.f32.vlgmr.msrb.gmra.mxu2 %v1775_v28  ;;  %1584 = vmatmul.msk.f32.vlgmr.msrb.gmra.mxu3 %vm439_vm2, %v1777_v29  ;;  %v183_v25 = vld [vmem:[#allocation2 + $0x30] sm:$0xff] }
  0x9a   :  { %616 = vmatpush.msrb.mxu2 %v239_v30  ;;  %636 = vmatpush.msrb.mxu3 %v303_v31  ;;  %v247_v27 = vld [vmem:[#allocation2 + $0x230] sm:$0xff]  ;;  %v228_v30 = vld [vmem:[#allocation2 + $0x198] sm:$0xff] }
  0x9b   :  { %659 = vmatpush.msrb.mxu0 %v355_v32  ;;  %680 = vmatpush.msrb.mxu1 %v415_v33  ;;  %v179_v31 = vld [vmem:[#allocation2 + $0x10] sm:$0xff]  ;;  %v420_v32 = vld [vmem:[#allocation2 + $0x798] sm:$0xff] }
  0x9c   :  { %592 = vmatmul.f32.vlgmr.msra.gmra.mxu1 %v1775_v28  ;;  %617 = vmatpush.msrb.mxu2 %v235_v34  ;;  %v243_v33 = vld [vmem:[#allocation2 + $0x210] sm:$0xff]  ;;  %v224_v34 = vld [vmem:[#allocation2 + $0x178] sm:$0xff] }
  0x9d   :  { %637 = vmatpush.msrb.mxu3 %v299_v35  ;;  %660 = vmatpush.msrb.mxu0 %v351_v36  ;;  %v304_v35 = vld [vmem:[#allocation2 + $0x3f8] sm:$0xff] }
  0x9e   :  { %681 = vmatpush.msrb.mxu1 %v411_v37  ;;  %618 = vmatpush.msrb.mxu2 %v231_v38  ;;  %v368_v36 = vld [vmem:[#allocation2 + $0x5f8] sm:$0xff] }
  0x9f   :  { %638 = vmatpush.msrb.mxu3 %v295_v39  ;;  %661 = vmatpush.msrb.mxu0 %v347_v40  ;;  %v416_v37 = vld [vmem:[#allocation2 + $0x778] sm:$0xff] }
  0xa0   :  { %682 = vmatpush.msrb.mxu1 %v407_v41  ;;  %572 = vmatmul.f32.vlgmr.msra.gmra.mxu0 %v1770_v15  ;;  %v220_v38 = vld [vmem:[#allocation2 + $0x158] sm:$0xff] }
  0xa1   :  { %619 = vmatpush.msrb.mxu2 %v227_v42  ;;  %639 = vmatpush.msrb.mxu3 %v291_v43  ;;  %v300_v39 = vld [vmem:[#allocation2 + $0x3d8] sm:$0xff] }
  0xa2   :  { %662 = vmatpush.msrb.mxu0 %v343_v44  ;;  %683 = vmatpush.msrb.mxu1 %v403_v45  ;;  %v364_v40 = vld [vmem:[#allocation2 + $0x5d8] sm:$0xff] }
  0xa3   :  { %552 = vmatmul.f32.vlgmr.msra.gmra.mxu3 %v1768_v14  ;;  %1586 = vmatmul.msk.f32.vlgmr.msra.gmra.mxu2 %vm439_vm2, %v1777_v29  ;;  %v412_v41 = vld [vmem:[#allocation2 + $0x758] sm:$0xff] }
  0xa4   :  { %620 = vmatpush.msrb.mxu2 %v223_v46  ;;  %640 = vmatpush.msrb.mxu3 %v287_v47  ;;  %v216_v42 = vld [vmem:[#allocation2 + $0x138] sm:$0xff] }
  0xa5   :  { %663 = vmatpush.msrb.mxu0 %v339_v48  ;;  %684 = vmatpush.msrb.mxu1 %v399_v49  ;;  %v296_v43 = vld [vmem:[#allocation2 + $0x3b8] sm:$0xff] }
  0xa6   :  { %621 = vmatpush.msrb.mxu2 %v219_v50  ;;  %641 = vmatpush.msrb.mxu3 %v283_v51  ;;  %v360_v44 = vld [vmem:[#allocation2 + $0x5b8] sm:$0xff] }
  0xa7   :  { %664 = vmatpush.msrb.mxu0 %v335_v52  ;;  %685 = vmatpush.msrb.mxu1 %v395_v53  ;;  %v408_v45 = vld [vmem:[#allocation2 + $0x738] sm:$0xff] }
  0xa8   :  { %622 = vmatpush.msrb.mxu2 %v215_v54  ;;  %642 = vmatpush.msrb.mxu3 %v279_v55  ;;  %v212_v46 = vld [vmem:[#allocation2 + $0x118] sm:$0xff] }
  0xa9   :  { %665 = vmatpush.msrb.mxu0 %v331_v56  ;;  %686 = vmatpush.msrb.mxu1 %v391_v57  ;;  %v292_v47 = vld [vmem:[#allocation2 + $0x398] sm:$0xff] }
  0xaa   :  { %623 = vmatpush.msrb.mxu2 %v211_v58  ;;  %643 = vmatpush.msrb.mxu3 %v275_v59  ;;  %v356_v48 = vld [vmem:[#allocation2 + $0x598] sm:$0xff] }
  0xab   :  { %666 = vmatpush.msrb.mxu0 %v327_v60  ;;  %687 = vmatpush.msrb.mxu1 %v387_v61  ;;  %v404_v49 = vld [vmem:[#allocation2 + $0x718] sm:$0xff] }
  0xac   :  { %624 = vmatpush.msrb.mxu2 %v207_v62  ;;  %644 = vmatpush.msrb.mxu3 %v271_v63  ;;  %v208_v50 = vld [vmem:[#allocation2 + $0xf8] sm:$0xff] }
  0xad   :  { %667 = vmatpush.msrb.mxu0 %v323_v0  ;;  %688 = vmatpush.msrb.mxu1 %v383_v1  ;;  %v288_v51 = vld [vmem:[#allocation2 + $0x378] sm:$0xff] }
  0xae   :  { %625 = vmatpush.msrb.mxu2 %v203_v2  ;;  %645 = vmatpush.msrb.mxu3 %v267_v3  ;;  %v352_v52 = vld [vmem:[#allocation2 + $0x578] sm:$0xff] }
  0xaf   :  { %668 = vmatpush.msrb.mxu0 %v319_v4  ;;  %689 = vmatpush.msrb.mxu1 %v379_v5  ;;  %v400_v53 = vld [vmem:[#allocation2 + $0x6f8] sm:$0xff] }
  0xb0   :  { %626 = vmatpush.msrb.mxu2 %v199_v6  ;;  %646 = vmatpush.msrb.mxu3 %v263_v7  ;;  %v204_v54 = vld [vmem:[#allocation2 + $0xd8] sm:$0xff] }
  0xb1   :  { %669 = vmatpush.msrb.mxu0 %v315_v8  ;;  %690 = vmatpush.msrb.mxu1 %v375_v9  ;;  %v284_v55 = vld [vmem:[#allocation2 + $0x358] sm:$0xff] }
  0xb2   :  { %627 = vmatpush.msrb.mxu2 %v195_v10  ;;  %647 = vmatpush.msrb.mxu3 %v259_v11  ;;  %v348_v56 = vld [vmem:[#allocation2 + $0x558] sm:$0xff] }
  0xb3   :  { %670 = vmatpush.msrb.mxu0 %v311_v12  ;;  %691 = vmatpush.msrb.mxu1 %v371_v13  ;;  %v396_v57 = vld [vmem:[#allocation2 + $0x6d8] sm:$0xff] }
  0xb4   :  { %1588 = vmatmul.msk.f32.vlgmr.msrb.gmra.mxu1 %vm439_vm2, %v1777_v29  ;;  %628 = vmatpush.msrb.mxu2 %v191_v16  ;;  %v200_v58 = vld [vmem:[#allocation2 + $0xb8] sm:$0xff] }
  0xb5   :  { %696 = vmatpush.msra.mxu1 %v240_v17  ;;  %648 = vmatpush.msrb.mxu3 %v255_v18  ;;  %v280_v59 = vld [vmem:[#allocation2 + $0x338] sm:$0xff] }
  0xb6   :  { %671 = vmatpush.msrb.mxu0 %v307_v19  ;;  %629 = vmatpush.msrb.mxu2 %v187_v20  ;;  %v344_v60 = vld [vmem:[#allocation2 + $0x538] sm:$0xff] }
  0xb7   :  { %672 = vmatmul.f32.vlgmr.msrb.gmra.mxu0 %v1775_v28  ;;  %697 = vmatpush.msra.mxu1 %v236_v21  ;;  %v392_v61 = vld [vmem:[#allocation2 + $0x6b8] sm:$0xff] }
  0xb8   :  { %1589 = vmatpush.msk.msra.mxu0 %vm443_vm1, %v428_v22  ;;  %649 = vmatpush.msrb.mxu3 %v251_v23  ;;  %v196_v62 = vld [vmem:[#allocation2 + $0x98] sm:$0xff]  ;;  %v840_v22 = vld [vmem:[#allocation4 + $0x1e0] sm:$0xff] }
  0xb9   :  { %698 = vmatpush.msra.mxu1 %v232_v24  ;;  %630 = vmatpush.msrb.mxu2 %v183_v25  ;;  %v276_v63 = vld [vmem:[#allocation2 + $0x318] sm:$0xff]  ;;  %v904_v23 = vld [vmem:[#allocation4 + $0x3e0] sm:$0xff] }
  0xba   :  { %758 = vmatpush.msra.mxu0 %v424_v26  ;;  %650 = vmatpush.msrb.mxu3 %v247_v27  ;;  %v340_v0 = vld [vmem:[#allocation2 + $0x518] sm:$0xff]  ;;  %v836_v26 = vld [vmem:[#allocation4 + $0x1c0] sm:$0xff] }
  0xbb   :  { %699 = vmatpush.msra.mxu1 %v228_v30  ;;  %631 = vmatpush.msrb.mxu2 %v179_v31  ;;  %v388_v1 = vld [vmem:[#allocation2 + $0x698] sm:$0xff]  ;;  %v900_v27 = vld [vmem:[#allocation4 + $0x3c0] sm:$0xff] }
  0xbc   :  { %759 = vmatpush.msra.mxu0 %v420_v32  ;;  %651 = vmatpush.msrb.mxu3 %v243_v33  ;;  %v192_v2 = vld [vmem:[#allocation2 + $0x78] sm:$0xff]  ;;  %v832_v32 = vld [vmem:[#allocation4 + $0x1a0] sm:$0xff] }
  0xbd   :  { %632 = vmatmul.f32.vlgmr.msrb.gmra.mxu2 %v1768_v14  ;;  %652 = vmatmul.f32.vlgmr.msrb.gmra.mxu3 %v1770_v15  ;;  %v272_v3 = vld [vmem:[#allocation2 + $0x2f8] sm:$0xff]  ;;  %v896_v33 = vld [vmem:[#allocation4 + $0x3a0] sm:$0xff] }
  0xbe   :  { %700 = vmatpush.msra.mxu1 %v224_v34  ;;  %716 = vmatpush.msra.mxu2 %v304_v35  ;;  %v336_v4 = vld [vmem:[#allocation2 + $0x4f8] sm:$0xff] }
  0xbf   :  { %736 = vmatpush.msra.mxu3 %v368_v36  ;;  %760 = vmatpush.msra.mxu0 %v416_v37  ;;  %v384_v5 = vld [vmem:[#allocation2 + $0x678] sm:$0xff]  ;;  %v968_v36 = vld [vmem:[#allocation4 + $0x5e0] sm:$0xff] }
  0xc0   :  { %701 = vmatpush.msra.mxu1 %v220_v38  ;;  %717 = vmatpush.msra.mxu2 %v300_v39  ;;  %v188_v6 = vld [vmem:[#allocation2 + $0x58] sm:$0xff]  ;;  %v824_v37 = vld [vmem:[#allocation4 + $0x160] sm:$0xff] }
  0xc1   :  { %737 = vmatpush.msra.mxu3 %v364_v40  ;;  %761 = vmatpush.msra.mxu0 %v412_v41  ;;  %v268_v7 = vld [vmem:[#allocation2 + $0x2d8] sm:$0xff]  ;;  %v888_v38 = vld [vmem:[#allocation4 + $0x360] sm:$0xff] }
  0xc2   :  { %702 = vmatpush.msra.mxu1 %v216_v42  ;;  %718 = vmatpush.msra.mxu2 %v296_v43  ;;  %v332_v8 = vld [vmem:[#allocation2 + $0x4d8] sm:$0xff]  ;;  %v964_v39 = vld [vmem:[#allocation4 + $0x5c0] sm:$0xff] }
  0xc3   :  { %738 = vmatpush.msra.mxu3 %v360_v44  ;;  %762 = vmatpush.msra.mxu0 %v408_v45  ;;  %v380_v9 = vld [vmem:[#allocation2 + $0x658] sm:$0xff]  ;;  %v820_v40 = vld [vmem:[#allocation4 + $0x140] sm:$0xff] }
  0xc4   :  { %703 = vmatpush.msra.mxu1 %v212_v46  ;;  %719 = vmatpush.msra.mxu2 %v292_v47  ;;  %v184_v10 = vld [vmem:[#allocation2 + $0x38] sm:$0xff]  ;;  %v884_v41 = vld [vmem:[#allocation4 + $0x340] sm:$0xff] }
  0xc5   :  { %739 = vmatpush.msra.mxu3 %v356_v48  ;;  %763 = vmatpush.msra.mxu0 %v404_v49  ;;  %v264_v11 = vld [vmem:[#allocation2 + $0x2b8] sm:$0xff]  ;;  %v960_v42 = vld [vmem:[#allocation4 + $0x5a0] sm:$0xff] }
  0xc6   :  { %704 = vmatpush.msra.mxu1 %v208_v50  ;;  %720 = vmatpush.msra.mxu2 %v288_v51  ;;  %v328_v12 = vld [vmem:[#allocation2 + $0x4b8] sm:$0xff]  ;;  %v816_v43 = vld [vmem:[#allocation4 + $0x120] sm:$0xff] }
  0xc7   :  { %740 = vmatpush.msra.mxu3 %v352_v52  ;;  %764 = vmatpush.msra.mxu0 %v400_v53  ;;  %v376_v13 = vld [vmem:[#allocation2 + $0x638] sm:$0xff]  ;;  %v880_v44 = vld [vmem:[#allocation4 + $0x320] sm:$0xff] }
  0xc8   :  { %705 = vmatpush.msra.mxu1 %v204_v54  ;;  %721 = vmatpush.msra.mxu2 %v284_v55  ;;  %v180_v16 = vld [vmem:[#allocation2 + $0x18] sm:$0xff]  ;;  %v812_v45 = vld [vmem:[#allocation4 + $0x100] sm:$0xff] }
  0xc9   :  { %741 = vmatpush.msra.mxu3 %v348_v56  ;;  %765 = vmatpush.msra.mxu0 %v396_v57  ;;  %v260_v17 = vld [vmem:[#allocation2 + $0x298] sm:$0xff]  ;;  %v872_v46 = vld [vmem:[#allocation4 + $0x2e0] sm:$0xff] }
  0xca   :  { %706 = vmatpush.msra.mxu1 %v200_v58  ;;  %722 = vmatpush.msra.mxu2 %v280_v59  ;;  %v324_v18 = vld [vmem:[#allocation2 + $0x498] sm:$0xff]  ;;  %v804_v47 = vld [vmem:[#allocation4 + $0xc0] sm:$0xff] }
  0xcb   :  { %742 = vmatpush.msra.mxu3 %v344_v60  ;;  %766 = vmatpush.msra.mxu0 %v392_v61  ;;  %v372_v19 = vld [vmem:[#allocation2 + $0x618] sm:$0xff]  ;;  %v868_v48 = vld [vmem:[#allocation4 + $0x2c0] sm:$0xff] }
  0xcc   :  { %707 = vmatpush.msra.mxu1 %v196_v62  ;;  %723 = vmatpush.msra.mxu2 %v276_v63  ;;  %v256_v20 = vld [vmem:[#allocation2 + $0x278] sm:$0xff]  ;;  %v800_v49 = vld [vmem:[#allocation4 + $0xa0] sm:$0xff] }
  0xcd   :  { %743 = vmatpush.msra.mxu3 %v340_v0  ;;  %767 = vmatpush.msra.mxu0 %v388_v1  ;;  %v320_v21 = vld [vmem:[#allocation2 + $0x478] sm:$0xff]  ;;  %v864_v50 = vld [vmem:[#allocation4 + $0x2a0] sm:$0xff]  ;;  %v905_v1 = vld [vmem:[#allocation4 + $0x3e8] sm:$0xff] }
  0xce   :  { %708 = vmatpush.msra.mxu1 %v192_v2  ;;  %724 = vmatpush.msra.mxu2 %v272_v3  ;;  %v252_v24 = vld [vmem:[#allocation2 + $0x258] sm:$0xff]  ;;  %v796_v51 = vld [vmem:[#allocation4 + $0x80] sm:$0xff]  ;;  %v969_v2 = vld [vmem:[#allocation4 + $0x5e8] sm:$0xff] }
  0xcf   :  { %744 = vmatpush.msra.mxu3 %v336_v4  ;;  %768 = vmatpush.msra.mxu0 %v384_v5  ;;  %v316_v25 = vld [vmem:[#allocation2 + $0x458] sm:$0xff]  ;;  %v860_v52 = vld [vmem:[#allocation4 + $0x280] sm:$0xff]  ;;  %v901_v3 = vld [vmem:[#allocation4 + $0x3c8] sm:$0xff] }
  0xd0   :  { %709 = vmatpush.msra.mxu1 %v188_v6  ;;  %725 = vmatpush.msra.mxu2 %v268_v7  ;;  %v248_v30 = vld [vmem:[#allocation2 + $0x238] sm:$0xff]  ;;  %v792_v53 = vld [vmem:[#allocation4 + $0x60] sm:$0xff]  ;;  %v965_v4 = vld [vmem:[#allocation4 + $0x5c8] sm:$0xff] }
  0xd1   :  { %745 = vmatpush.msra.mxu3 %v332_v8  ;;  %769 = vmatpush.msra.mxu0 %v380_v9  ;;  %v312_v31 = vld [vmem:[#allocation2 + $0x438] sm:$0xff]  ;;  %v856_v54 = vld [vmem:[#allocation4 + $0x260] sm:$0xff]  ;;  %v897_v5 = vld [vmem:[#allocation4 + $0x3a8] sm:$0xff] }
  0xd2   :  { %710 = vmatpush.msra.mxu1 %v184_v10  ;;  %726 = vmatpush.msra.mxu2 %v264_v11  ;;  %v244_v34 = vld [vmem:[#allocation2 + $0x218] sm:$0xff]  ;;  %v956_v55 = vld [vmem:[#allocation4 + $0x580] sm:$0xff]  ;;  %v961_v6 = vld [vmem:[#allocation4 + $0x5a8] sm:$0xff] }
  0xd3   :  { %746 = vmatpush.msra.mxu3 %v328_v12  ;;  %770 = vmatpush.msra.mxu0 %v376_v13  ;;  %v308_v35 = vld [vmem:[#allocation2 + $0x418] sm:$0xff]  ;;  %v788_v56 = vld [vmem:[#allocation4 + $0x40] sm:$0xff]  ;;  %v893_v9 = vld [vmem:[#allocation4 + $0x388] sm:$0xff] }
  0xd4   :  { %711 = vmatpush.msra.mxu1 %v180_v16  ;;  %727 = vmatpush.msra.mxu2 %v260_v17  ;;  %v852_v57 = vld [vmem:[#allocation4 + $0x240] sm:$0xff]  ;;  %v957_v10 = vld [vmem:[#allocation4 + $0x588] sm:$0xff] }
  0xd5   :  { %747 = vmatpush.msra.mxu3 %v324_v18  ;;  %771 = vmatpush.msra.mxu0 %v372_v19  ;;  %v952_v58 = vld [vmem:[#allocation4 + $0x560] sm:$0xff]  ;;  %v889_v11 = vld [vmem:[#allocation4 + $0x368] sm:$0xff] }
  0xd6   :  { %712 = vmatmul.f32.vlgmr.msra.gmra.mxu1 %v1768_v14  ;;  %1590 = vmatmul.msk.f32.vlgmr.msra.gmra.mxu0 %vm439_vm2, %v1777_v29  ;;  %v828_v14 = vld [vmem:[#allocation4 + $0x180] sm:$0xff]  ;;  %v953_v12 = vld [vmem:[#allocation4 + $0x568] sm:$0xff] }
  0xd7   :  { %728 = vmatpush.msra.mxu2 %v256_v20  ;;  %748 = vmatpush.msra.mxu3 %v320_v21  ;;  %v892_v29 = vld [vmem:[#allocation4 + $0x380] sm:$0xff]  ;;  %v885_v13 = vld [vmem:[#allocation4 + $0x348] sm:$0xff] }
  0xd8   :  { %1057 = vmatpush.msrb.mxu0 %v840_v22  ;;  %1077 = vmatpush.msrb.mxu1 %v904_v23  ;;  %v948_v59 = vld [vmem:[#allocation4 + $0x540] sm:$0xff]  ;;  %v949_v16 = vld [vmem:[#allocation4 + $0x548] sm:$0xff] }
  0xd9   :  { %729 = vmatpush.msra.mxu2 %v252_v24  ;;  %749 = vmatpush.msra.mxu3 %v316_v25  ;;  %v784_v60 = vld [vmem:[#allocation4 + $0x20] sm:$0xff]  ;;  %v881_v17 = vld [vmem:[#allocation4 + $0x328] sm:$0xff] }
  0xda   :  { %1058 = vmatpush.msrb.mxu0 %v836_v26  ;;  %1078 = vmatpush.msrb.mxu1 %v900_v27  ;;  %v848_v61 = vld [vmem:[#allocation4 + $0x220] sm:$0xff]  ;;  %v945_v19 = vld [vmem:[#allocation4 + $0x528] sm:$0xff] }
  0xdb   :  { %730 = vmatpush.msra.mxu2 %v248_v30  ;;  %750 = vmatpush.msra.mxu3 %v312_v31  ;;  %v944_v62 = vld [vmem:[#allocation4 + $0x520] sm:$0xff]  ;;  %v877_v21 = vld [vmem:[#allocation4 + $0x308] sm:$0xff] }
  0xdc   :  { %1059 = vmatpush.msrb.mxu0 %v832_v32  ;;  %1079 = vmatpush.msrb.mxu1 %v896_v33  ;;  %v780_v63 = vld [vmem:[#allocation4] sm:$0xff]  ;;  %v941_v22 = vld [vmem:[#allocation4 + $0x508] sm:$0xff] }
  0xdd   :  { %731 = vmatpush.msra.mxu2 %v244_v34  ;;  %751 = vmatpush.msra.mxu3 %v308_v35  ;;  %v844_v0 = vld [vmem:[#allocation4 + $0x200] sm:$0xff]  ;;  %v873_v24 = vld [vmem:[#allocation4 + $0x2e8] sm:$0xff] }
  0xde   :  { %732 = vmatmul.f32.vlgmr.msra.gmra.mxu2 %v1770_v15  ;;  %752 = vmatmul.f32.vlgmr.msra.gmra.mxu3 %v1775_v28  ;;  %v876_v15 = vld [vmem:[#allocation4 + $0x300] sm:$0xff]  ;;  %v937_v25 = vld [vmem:[#allocation4 + $0x4e8] sm:$0xff] }
  0xdf   :  { %1060 = vmatpush.msrb.mxu0 %v828_v14  ;;  %1080 = vmatpush.msrb.mxu1 %v892_v29  ;;  %v808_v28 = vld [vmem:[#allocation4 + $0xe0] sm:$0xff]  ;;  %v869_v27 = vld [vmem:[#allocation4 + $0x2c8] sm:$0xff] }
  0xe0   :  { %1097 = vmatpush.msrb.mxu2 %v968_v36  ;;  %v940_v7 = vld [vmem:[#allocation4 + $0x500] sm:$0xff]  ;;  %v933_v30 = vld [vmem:[#allocation4 + $0x4c8] sm:$0xff] }
  0xe1   :  { %1061 = vmatpush.msrb.mxu0 %v824_v37  ;;  %1081 = vmatpush.msrb.mxu1 %v888_v38  ;;  %v936_v8 = vld [vmem:[#allocation4 + $0x4e0] sm:$0xff]  ;;  %v865_v31 = vld [vmem:[#allocation4 + $0x2a8] sm:$0xff] }
  0xe2   :  { %1098 = vmatpush.msrb.mxu2 %v964_v39  ;;  %v932_v18 = vld [vmem:[#allocation4 + $0x4c0] sm:$0xff]  ;;  %v929_v33 = vld [vmem:[#allocation4 + $0x4a8] sm:$0xff] }
  0xe3   :  { %1062 = vmatpush.msrb.mxu0 %v820_v40  ;;  %1082 = vmatpush.msrb.mxu1 %v884_v41  ;;  %v928_v20 = vld [vmem:[#allocation4 + $0x4a0] sm:$0xff]  ;;  %v861_v34 = vld [vmem:[#allocation4 + $0x288] sm:$0xff] }
  0xe4   :  { %1099 = vmatpush.msrb.mxu2 %v960_v42  ;;  %v924_v23 = vld [vmem:[#allocation4 + $0x480] sm:$0xff]  ;;  %v925_v14 = vld [vmem:[#allocation4 + $0x488] sm:$0xff] }
  0xe5   :  { %1063 = vmatpush.msrb.mxu0 %v816_v43  ;;  %1083 = vmatpush.msrb.mxu1 %v880_v44  ;;  %v920_v26 = vld [vmem:[#allocation4 + $0x460] sm:$0xff]  ;;  %v857_v29 = vld [vmem:[#allocation4 + $0x268] sm:$0xff] }
  0xe6   :  { %1100 = vmatpush.msrb.mxu2 %v956_v55  ;;  %v916_v32 = vld [vmem:[#allocation4 + $0x440] sm:$0xff]  ;;  %v921_v39 = vld [vmem:[#allocation4 + $0x468] sm:$0xff] }
  0xe7   :  { %1064 = vmatpush.msrb.mxu0 %v812_v45  ;;  %1084 = vmatpush.msrb.mxu1 %v876_v15  ;;  %v912_v35 = vld [vmem:[#allocation4 + $0x420] sm:$0xff]  ;;  %v853_v40 = vld [vmem:[#allocation4 + $0x248] sm:$0xff] }
  0xe8   :  { %1101 = vmatpush.msrb.mxu2 %v952_v58  ;;  %v1028_v36 = vld [vmem:[#allocation4 + $0x7c0] sm:$0xf]  ;;  %v1029_v42 = vld [vmem:[#allocation4 + $0x7c8] sm:$0xf] }
  0xe9   :  { %1065 = vmatpush.msrb.mxu0 %v808_v28  ;;  %1085 = vmatpush.msrb.mxu1 %v872_v46  ;;  %v1801_v37 = vld [vmem:[%s2051_s6] sm:$0xf]  ;;  %v917_v43 = vld [vmem:[#allocation4 + $0x448] sm:$0xff] }
  0xea   :  { %1102 = vmatpush.msrb.mxu2 %v948_v59  ;;  %v908_v38 = vld [vmem:[#allocation4 + $0x400] sm:$0xff]  ;;  %1591 = vmatpush.msk.msrb.mxu3 %vm443_vm1, %v1028_v36  ;;  %v1025_v45 = vld [vmem:[#allocation4 + $0x7a8] sm:$0xff]  ;;  %v431_v15 = vperm.slane %v1801_v37, 0 }
  0xeb   :  { %1066 = vmatpush.msrb.mxu0 %v804_v47  ;;  %1086 = vmatpush.msrb.mxu1 %v868_v48  ;;  %v1024_v41 = vld [vmem:[#allocation4 + $0x7a0] sm:$0xff]  ;;  %v849_v28 = vld [vmem:[#allocation4 + $0x228] sm:$0xff] }
  0xec   :  { %1103 = vmatpush.msrb.mxu2 %v944_v62  ;;  %v1020_v44 = vld [vmem:[#allocation4 + $0x780] sm:$0xff]  ;;  %1119 = vmatpush.msrb.mxu3 %v1024_v41  ;;  %v913_v46 = vld [vmem:[#allocation4 + $0x428] sm:$0xff]  ;;  %v1030_v41 = vld [vmem:[#allocation4 + $0x7d0] sm:$0xf] }
  0xed   :  { %1067 = vmatpush.msrb.mxu0 %v800_v49  ;;  %1087 = vmatpush.msrb.mxu1 %v864_v50  ;;  %v1016_v47 = vld [vmem:[#allocation4 + $0x760] sm:$0xff]  ;;  %v1021_v48 = vld [vmem:[#allocation4 + $0x788] sm:$0xff] }
  0xee   :  { %1104 = vmatpush.msrb.mxu2 %v940_v7  ;;  %v845_v49 = vld [vmem:[#allocation4 + $0x208] sm:$0xff]  ;;  %1120 = vmatpush.msrb.mxu3 %v1020_v44  ;;  %v1008_v55 = vld [vmem:[#allocation4 + $0x720] sm:$0xff]  ;;  %v1026_v44 = vld [vmem:[#allocation4 + $0x7b0] sm:$0xff] }
  0xef   :  { %1068 = vmatpush.msrb.mxu0 %v796_v51  ;;  %1088 = vmatpush.msrb.mxu1 %v860_v52  ;;  %v909_v50 = vld [vmem:[#allocation4 + $0x408] sm:$0xff]  ;;  %v1012_v52 = vld [vmem:[#allocation4 + $0x740] sm:$0xff] }
  0xf0   :  { %1105 = vmatpush.msrb.mxu2 %v936_v8  ;;  %1121 = vmatpush.msrb.mxu3 %v1016_v47  ;;  %v1004_v58 = vld [vmem:[#allocation4 + $0x700] sm:$0xff]  ;;  %v1009_v59 = vld [vmem:[#allocation4 + $0x728] sm:$0xff]  ;;  %v970_v8 = vld [vmem:[#allocation4 + $0x5f0] sm:$0xff] }
  0xf1   :  { %1069 = vmatpush.msrb.mxu0 %v792_v53  ;;  %1089 = vmatpush.msrb.mxu1 %v856_v54  ;;  %v1017_v53 = vld [vmem:[#allocation4 + $0x768] sm:$0xff] }
  0xf2   :  { %1106 = vmatpush.msrb.mxu2 %v932_v18  ;;  %1122 = vmatpush.msrb.mxu3 %v1012_v52  ;;  %v1005_v62 = vld [vmem:[#allocation4 + $0x708] sm:$0xff]  ;;  %v980_v18 = vld [vmem:[#allocation4 + $0x640] sm:$0xff]  ;;  %v926_v52 = vld [vmem:[#allocation4 + $0x490] sm:$0xff] }
  0xf3   :  { %1070 = vmatpush.msrb.mxu0 %v788_v56  ;;  %1090 = vmatpush.msrb.mxu1 %v852_v57  ;;  %v1013_v56 = vld [vmem:[#allocation4 + $0x748] sm:$0xff] }
  0xf4   :  { %1107 = vmatpush.msrb.mxu2 %v928_v20  ;;  %1123 = vmatpush.msrb.mxu3 %v1008_v55  ;;  %v837_v36 = vld [vmem:[#allocation4 + $0x1c8] sm:$0xff]  ;;  %v922_v55 = vld [vmem:[#allocation4 + $0x470] sm:$0xff] }
  0xf5   :  { %1071 = vmatpush.msrb.mxu0 %v784_v60  ;;  %1091 = vmatpush.msrb.mxu1 %v848_v61  ;;  %v1000_v61 = vld [vmem:[#allocation4 + $0x6e0] sm:$0xff]  ;;  %v825_v47 = vld [vmem:[#allocation4 + $0x168] sm:$0xff] }
  0xf6   :  { %1108 = vmatpush.msrb.mxu2 %v924_v23  ;;  %1124 = vmatpush.msrb.mxu3 %v1004_v58  ;;  %v976_v23 = vld [vmem:[#allocation4 + $0x620] sm:$0xff]  ;;  %v918_v58 = vld [vmem:[#allocation4 + $0x450] sm:$0xff] }
  0xf7   :  { %1072 = vmatpush.msrb.mxu0 %v780_v63  ;;  %1092 = vmatpush.msrb.mxu1 %v844_v0 }
  0xf8   :  { %1109 = vmatpush.msrb.mxu2 %v920_v26  ;;  %1125 = vmatpush.msrb.mxu3 %v1000_v61  ;;  %v1002_v61 = vld [vmem:[#allocation4 + $0x6f0] sm:$0xff] }
  0xf9   :  { %1157 = vmatpush.msra.mxu0 %v905_v1  ;;  %1177 = vmatpush.msra.mxu1 %v969_v2  ;;  %v996_v1 = vld [vmem:[#allocation4 + $0x6c0] sm:$0xff]  ;;  %v1001_v2 = vld [vmem:[#allocation4 + $0x6e8] sm:$0xff] }
  0xfa   :  { %1110 = vmatpush.msrb.mxu2 %v916_v32  ;;  %1126 = vmatpush.msrb.mxu3 %v996_v1  ;;  %v910_v1 = vld [vmem:[#allocation4 + $0x410] sm:$0xff] }
  0xfb   :  { %1158 = vmatpush.msra.mxu0 %v901_v3  ;;  %1178 = vmatpush.msra.mxu1 %v965_v4  ;;  %v992_v4 = vld [vmem:[#allocation4 + $0x6a0] sm:$0xff] }
  0xfc   :  { %1111 = vmatpush.msrb.mxu2 %v912_v35  ;;  %1127 = vmatpush.msrb.mxu3 %v992_v4  ;;  %v950_v35 = vld [vmem:[#allocation4 + $0x550] sm:$0xff]  ;;  %v801_v4 = vld [vmem:[#allocation4 + $0xa8] sm:$0xff] }
  0xfd   :  { %1159 = vmatpush.msra.mxu0 %v897_v5  ;;  %1179 = vmatpush.msra.mxu1 %v961_v6  ;;  %v997_v5 = vld [vmem:[#allocation4 + $0x6c8] sm:$0xff] }
  0xfe   :  { %1112 = vmatpush.msrb.mxu2 %v908_v38 }
  0xff   :  { %1160 = vmatpush.msra.mxu0 %v893_v9  ;;  %1180 = vmatpush.msra.mxu1 %v957_v10  ;;  %v988_v9 = vld [vmem:[#allocation4 + $0x680] sm:$0xff]  ;;  %v993_v10 = vld [vmem:[#allocation4 + $0x6a8] sm:$0xff] }
 0x100   :  { %1593 = vmatpush.msk.msra.mxu2 %vm443_vm1, %v1029_v42  ;;  %1128 = vmatpush.msrb.mxu3 %v988_v9  ;;  %v942_v42 = vld [vmem:[#allocation4 + $0x510] sm:$0xff]  ;;  %v1027_v9 = vld [vmem:[#allocation4 + $0x7b8] sm:$0xff] }
 0x101   :  { %1161 = vmatpush.msra.mxu0 %v889_v11  ;;  %1181 = vmatpush.msra.mxu1 %v953_v12  ;;  %v432_v11 = vperm.slane %v1801_v37, 1  ;;  %v966_v12 = vld [vmem:[#allocation4 + $0x5d0] sm:$0xff] }
 0x102   :  { %1199 = vmatpush.msra.mxu2 %v1025_v45  ;;  %v938_v45 = vld [vmem:[#allocation4 + $0x4f0] sm:$0xff] }
 0x103   :  { %1162 = vmatpush.msra.mxu0 %v885_v13  ;;  %1182 = vmatpush.msra.mxu1 %v949_v16  ;;  %v984_v13 = vld [vmem:[#allocation4 + $0x660] sm:$0xff]  ;;  %v989_v16 = vld [vmem:[#allocation4 + $0x688] sm:$0xff] }
 0x104   :  { %1200 = vmatpush.msra.mxu2 %v1021_v48  ;;  %1129 = vmatpush.msrb.mxu3 %v984_v13  ;;  %v1018_v48 = vld [vmem:[#allocation4 + $0x770] sm:$0xff] }
 0x105   :  { %1163 = vmatpush.msra.mxu0 %v881_v17  ;;  %1183 = vmatpush.msra.mxu1 %v945_v19  ;;  %v962_v17 = vld [vmem:[#allocation4 + $0x5b0] sm:$0xff]  ;;  %v985_v19 = vld [vmem:[#allocation4 + $0x668] sm:$0xff] }
 0x106   :  { %1201 = vmatpush.msra.mxu2 %v1017_v53  ;;  %1130 = vmatpush.msrb.mxu3 %v980_v18  ;;  %v817_v53 = vld [vmem:[#allocation4 + $0x128] sm:$0xff] }
 0x107   :  { %1164 = vmatpush.msra.mxu0 %v877_v21  ;;  %1184 = vmatpush.msra.mxu1 %v941_v22  ;;  %v958_v22 = vld [vmem:[#allocation4 + $0x590] sm:$0xff] }
 0x108   :  { %1202 = vmatpush.msra.mxu2 %v1013_v56  ;;  %1131 = vmatpush.msrb.mxu3 %v976_v23  ;;  %v813_v56 = vld [vmem:[#allocation4 + $0x108] sm:$0xff] }
 0x109   :  { %1165 = vmatpush.msra.mxu0 %v873_v24  ;;  %1185 = vmatpush.msra.mxu1 %v937_v25  ;;  %v981_v24 = vld [vmem:[#allocation4 + $0x648] sm:$0xff] }
 0x10a   :  { %1203 = vmatpush.msra.mxu2 %v1009_v59  ;;  %v809_v59 = vld [vmem:[#allocation4 + $0xe8] sm:$0xff] }
 0x10b   :  { %1166 = vmatpush.msra.mxu0 %v869_v27  ;;  %1186 = vmatpush.msra.mxu1 %v933_v30  ;;  %v954_v27 = vld [vmem:[#allocation4 + $0x570] sm:$0xff]  ;;  %v972_v30 = vld [vmem:[#allocation4 + $0x600] sm:$0xff] }
 0x10c   :  { %1204 = vmatpush.msra.mxu2 %v1005_v62  ;;  %1132 = vmatpush.msrb.mxu3 %v972_v30  ;;  %v914_v62 = vld [vmem:[#allocation4 + $0x430] sm:$0xff]  ;;  %v1015_v30 = vld [vmem:[#allocation4 + $0x758] sm:$0xff] }
 0x10d   :  { %1167 = vmatpush.msra.mxu0 %v865_v31  ;;  %1187 = vmatpush.msra.mxu1 %v929_v33  ;;  %v977_v31 = vld [vmem:[#allocation4 + $0x628] sm:$0xff] }
 0x10e   :  { %1205 = vmatpush.msra.mxu2 %v1001_v2  ;;  %v841_v33 = vld [vmem:[#allocation4 + $0x1e8] sm:$0xff] }
 0x10f   :  { %1168 = vmatpush.msra.mxu0 %v861_v34  ;;  %1188 = vmatpush.msra.mxu1 %v925_v14  ;;  %v473_v51 = vpop.f32.mrf.mxu0  ;;  %v493_v57 = vpop.f32.mrf.mxu1  ;;  %v973_v14 = vld [vmem:[#allocation4 + $0x608] sm:$0xff] }
 0x110   :  { %v474_v54 = vadd.f32 %v473_v51, %v431_v15  ;;  %1206 = vmatpush.msra.mxu2 %v997_v5  ;;  %1137 = vmatpush.msra.mxu3 %v841_v33  ;;  %v829_v15 = vld [vmem:[#allocation4 + $0x188] sm:$0xff]  ;;  %v1014_v51 = vld [vmem:[#allocation4 + $0x750] sm:$0xff] }
 0x111   :  { %1169 = vmatpush.msra.mxu0 %v857_v29  ;;  %1189 = vmatpush.msra.mxu1 %v921_v39  ;;  %v946_v39 = vld [vmem:[#allocation4 + $0x530] sm:$0xff] }
 0x112   :  { %v494_v60 = vadd.f32 %v493_v57, %v474_v54  ;;  %1207 = vmatpush.msra.mxu2 %v993_v10  ;;  %1138 = vmatpush.msra.mxu3 %v837_v36  ;;  %v1010_v54 = vld [vmem:[#allocation4 + $0x730] sm:$0xff]  ;;  %v797_v10 = vld [vmem:[#allocation4 + $0x88] sm:$0xff] }
 0x113   :  { %1170 = vmatpush.msra.mxu0 %v853_v40  ;;  %1190 = vmatpush.msra.mxu1 %v917_v43  ;;  %v833_v43 = vld [vmem:[#allocation4 + $0x1a8] sm:$0xff]  ;;  %v1006_v57 = vld [vmem:[#allocation4 + $0x710] sm:$0xff] }
 0x114   :  { %1208 = vmatpush.msra.mxu2 %v989_v16  ;;  %1139 = vmatpush.msra.mxu3 %v833_v43  ;;  %v1023_v16 = vld [vmem:[#allocation4 + $0x798] sm:$0xff]  ;;  %v974_v33 = vld [vmem:[#allocation4 + $0x610] sm:$0xff]  ;;  %v781_v36 = vld [vmem:[#allocation4 + $0x8] sm:$0xff] }
 0x115   :  { %1171 = vmatpush.msra.mxu0 %v849_v28  ;;  %1191 = vmatpush.msra.mxu1 %v913_v46  ;;  %v1022_v28 = vld [vmem:[#allocation4 + $0x790] sm:$0xff]  ;;  %v835_v43 = vld [vmem:[#allocation4 + $0x1b8] sm:$0xff] }
 0x116   :  { %1209 = vmatpush.msra.mxu2 %v985_v19  ;;  %v934_v46 = vld [vmem:[#allocation4 + $0x4d0] sm:$0xff]  ;;  %1140 = vmatpush.msra.mxu3 %v829_v15  ;;  %v831_v15 = vld [vmem:[#allocation4 + $0x198] sm:$0xff] }
 0x117   :  { %1172 = vmatpush.msra.mxu0 %v845_v49  ;;  %1192 = vmatpush.msra.mxu1 %v909_v50  ;;  %v930_v49 = vld [vmem:[#allocation4 + $0x4b0] sm:$0xff]  ;;  %v821_v50 = vld [vmem:[#allocation4 + $0x148] sm:$0xff] }
 0x118   :  { %1210 = vmatpush.msra.mxu2 %v981_v24  ;;  %1141 = vmatpush.msra.mxu3 %v825_v47  ;;  %v986_v19 = vld [vmem:[#allocation4 + $0x670] sm:$0xff]  ;;  %v827_v47 = vld [vmem:[#allocation4 + $0x178] sm:$0xff] }
 0x119   :  { %v593_v32 = vpop.f32.mrf.mxu1  ;;  %v982_v24 = vld [vmem:[#allocation4 + $0x650] sm:$0xff] }
 0x11a   :  { %1211 = vmatpush.msra.mxu2 %v977_v31  ;;  %1142 = vmatpush.msra.mxu3 %v821_v50  ;;  %v838_v31 = vld [vmem:[#allocation4 + $0x1d0] sm:$0xff]  ;;  %v823_v50 = vld [vmem:[#allocation4 + $0x158] sm:$0xff] }
 0x11c   :  { %v513_v63 = vpop.f32.mrf.mxu2  ;;  %v533_v0 = vpop.f32.mrf.mxu3  ;;  %1212 = vmatpush.msra.mxu2 %v973_v14  ;;  %1143 = vmatpush.msra.mxu3 %v817_v53  ;;  %v843_v14 = vld [vmem:[#allocation4 + $0x1f8] sm:$0xff] }
 0x11d   :  { %v514_v3 = vadd.f32 %v513_v63, %v494_v60  ;;  %v573_v25 = vpop.f32.mrf.mxu0  ;;  %v433_v60 = vperm.slane %v1801_v37, 2  ;;  %v805_v63 = vld [vmem:[#allocation4 + $0xc8] sm:$0xff]  ;;  %v819_v53 = vld [vmem:[#allocation4 + $0x138] sm:$0xff] }
 0x11e   :  { %1144 = vmatpush.msra.mxu3 %v813_v56  ;;  %v815_v56 = vld [vmem:[#allocation4 + $0x118] sm:$0xff] }
 0x11f   :  { %v534_v6 = vadd.f32 %v533_v0, %v514_v3  ;;  %v998_v0 = vld [vmem:[#allocation4 + $0x6d0] sm:$0xff]  ;;  %v1031_v3 = vld [vmem:[#allocation4 + $0x7d8] sm:$0xf] }
 0x120   :  { %1145 = vmatpush.msra.mxu3 %v809_v59 }
 0x121   :  { %v1806_v7 = vmax.f32 %v534_v6, 0.0  ;;  %v994_v6 = vld [vmem:[#allocation4 + $0x6b0] sm:$0xff] }
 0x122   :  { %1146 = vmatpush.msra.mxu3 %v805_v63  ;;  %v798_v63 = vld [vmem:[#allocation4 + $0x90] sm:$0xff] }
 0x123   :  { %1073 = vmatmul.f32.vlgmr.msrb.gmra.mxu0 %v1806_v7 }
 0x124   :  { %1257 = vmatpush.msrb.mxu0 %v970_v8  ;;  %1147 = vmatpush.msra.mxu3 %v801_v4  ;;  %v803_v4 = vld [vmem:[#allocation4 + $0xb8] sm:$0xff] }
 0x126   :  { %v553_v20 = vpop.f32.mrf.mxu3  ;;  %1258 = vmatpush.msrb.mxu0 %v966_v12  ;;  %v613_v29 = vpop.f32.mrf.mxu2  ;;  %v990_v12 = vld [vmem:[#allocation4 + $0x690] sm:$0xff]  ;;  %1148 = vmatpush.msra.mxu3 %v797_v10 }
 0x127   :  { %v554_v21 = vadd.f32 %v553_v20, %v432_v11 }
 0x128   :  { %1259 = vmatpush.msrb.mxu0 %v962_v17  ;;  %v793_v17 = vld [vmem:[#allocation4 + $0x68] sm:$0xff] }
 0x129   :  { %v574_v26 = vadd.f32 %v573_v25, %v554_v21  ;;  %v1019_v21 = vld [vmem:[#allocation4 + $0x778] sm:$0xff]  ;;  %1149 = vmatpush.msra.mxu3 %v793_v17  ;;  %v906_v17 = vld [vmem:[#allocation4 + $0x3f0] sm:$0xff] }
 0x12a   :  { %1260 = vmatpush.msrb.mxu0 %v958_v22  ;;  %v789_v22 = vld [vmem:[#allocation4 + $0x48] sm:$0xff] }
 0x12b   :  { %v594_v34 = vadd.f32 %v593_v32, %v574_v26  ;;  %v842_v26 = vld [vmem:[#allocation4 + $0x1f0] sm:$0xff]  ;;  %1150 = vmatpush.msra.mxu3 %v789_v22  ;;  %v785_v32 = vld [vmem:[#allocation4 + $0x28] sm:$0xff] }
 0x12c   :  { %1261 = vmatpush.msrb.mxu0 %v954_v27  ;;  %v978_v27 = vld [vmem:[#allocation4 + $0x630] sm:$0xff] }
 0x12d   :  { %v614_v38 = vadd.f32 %v613_v29, %v594_v34  ;;  %v1011_v34 = vld [vmem:[#allocation4 + $0x738] sm:$0xff]  ;;  %1151 = vmatpush.msra.mxu3 %v785_v32  ;;  %v898_v22 = vld [vmem:[#allocation4 + $0x3b0] sm:$0xff] }
 0x12e   :  { %1262 = vmatpush.msrb.mxu0 %v950_v35  ;;  %v834_v35 = vld [vmem:[#allocation4 + $0x1b0] sm:$0xff]  ;;  %v1007_v29 = vld [vmem:[#allocation4 + $0x718] sm:$0xff] }
 0x12f   :  { %v1810_v40 = vmax.f32 %v614_v38, 0.0  ;;  %v830_v38 = vld [vmem:[#allocation4 + $0x190] sm:$0xff]  ;;  %1152 = vmatpush.msra.mxu3 %v781_v36  ;;  %v895_v32 = vld [vmem:[#allocation4 + $0x398] sm:$0xff] }
 0x130   :  { %1263 = vmatpush.msrb.mxu0 %v946_v39  ;;  %v839_v39 = vld [vmem:[#allocation4 + $0x1d8] sm:$0xff] }
 0x131   :  { %1093 = vmatmul.f32.vlgmr.msrb.gmra.mxu1 %v1810_v40  ;;  %1173 = vmatmul.f32.vlgmr.msra.gmra.mxu0 %v1810_v40  ;;  %v693_v20 = vpop.f32.mrf.mxu1  ;;  %v883_v36 = vld [vmem:[#allocation4 + $0x338] sm:$0xff] }
 0x132   :  { %1595 = vmatpush.msk.msrb.mxu1 %vm443_vm1, %v1030_v41  ;;  %1264 = vmatpush.msrb.mxu0 %v942_v42  ;;  %v1003_v41 = vld [vmem:[#allocation4 + $0x6f8] sm:$0xff]  ;;  %v826_v42 = vld [vmem:[#allocation4 + $0x170] sm:$0xff] }
 0x134   :  { %1279 = vmatpush.msrb.mxu1 %v1026_v44  ;;  %1265 = vmatpush.msrb.mxu0 %v938_v45  ;;  %v673_v13 = vpop.f32.mrf.mxu0  ;;  %v999_v44 = vld [vmem:[#allocation4 + $0x6d8] sm:$0xff]  ;;  %v822_v45 = vld [vmem:[#allocation4 + $0x150] sm:$0xff] }
 0x136   :  { %1280 = vmatpush.msrb.mxu1 %v1022_v28  ;;  %1266 = vmatpush.msrb.mxu0 %v934_v46  ;;  %v995_v28 = vld [vmem:[#allocation4 + $0x6b8] sm:$0xff]  ;;  %v818_v46 = vld [vmem:[#allocation4 + $0x130] sm:$0xff] }
 0x138   :  { %1281 = vmatpush.msrb.mxu1 %v1018_v48  ;;  %1267 = vmatpush.msrb.mxu0 %v930_v49  ;;  %v991_v48 = vld [vmem:[#allocation4 + $0x698] sm:$0xff]  ;;  %v814_v49 = vld [vmem:[#allocation4 + $0x110] sm:$0xff] }
 0x13a   :  { %1282 = vmatpush.msrb.mxu1 %v1014_v51  ;;  %1268 = vmatpush.msrb.mxu0 %v926_v52  ;;  %v987_v51 = vld [vmem:[#allocation4 + $0x678] sm:$0xff]  ;;  %v810_v52 = vld [vmem:[#allocation4 + $0xf0] sm:$0xff] }
 0x13c   :  { %1283 = vmatpush.msrb.mxu1 %v1010_v54  ;;  %1269 = vmatpush.msrb.mxu0 %v922_v55  ;;  %v983_v54 = vld [vmem:[#allocation4 + $0x658] sm:$0xff]  ;;  %v806_v55 = vld [vmem:[#allocation4 + $0xd0] sm:$0xff] }
 0x13e   :  { %1284 = vmatpush.msrb.mxu1 %v1006_v57  ;;  %1270 = vmatpush.msrb.mxu0 %v918_v58  ;;  %v434_v57 = vperm.slane %v1801_v37, 3  ;;  %v979_v58 = vld [vmem:[#allocation4 + $0x638] sm:$0xff] }
 0x140   :  { %v633_v2 = vpop.f32.mrf.mxu2  ;;  %1285 = vmatpush.msrb.mxu1 %v1002_v61  ;;  %1271 = vmatpush.msrb.mxu0 %v914_v62  ;;  %v653_v8 = vpop.f32.mrf.mxu3  ;;  %v811_v61 = vld [vmem:[#allocation4 + $0xf8] sm:$0xff] }
 0x141   :  { %v634_v5 = vadd.f32 %v633_v2, %v433_v60  ;;  %v802_v60 = vld [vmem:[#allocation4 + $0xb0] sm:$0xff]  ;;  %v975_v62 = vld [vmem:[#allocation4 + $0x618] sm:$0xff] }
 0x142   :  { %1286 = vmatpush.msrb.mxu1 %v998_v0  ;;  %1272 = vmatpush.msrb.mxu0 %v910_v1  ;;  %v807_v0 = vld [vmem:[#allocation4 + $0xd8] sm:$0xff] }
 0x143   :  { %v654_v11 = vadd.f32 %v653_v8, %v634_v5  ;;  %v799_v8 = vld [vmem:[#allocation4 + $0x98] sm:$0xff] }
 0x144   :  { %1597 = vmatpush.msk.msra.mxu0 %vm443_vm1, %v1031_v3  ;;  %1287 = vmatpush.msrb.mxu1 %v994_v6  ;;  %v794_v3 = vld [vmem:[#allocation4 + $0x70] sm:$0xff] }
 0x145   :  { %v674_v18 = vadd.f32 %v673_v13, %v654_v11  ;;  %v790_v6 = vld [vmem:[#allocation4 + $0x50] sm:$0xff] }
 0x146   :  { %1359 = vmatpush.msra.mxu0 %v1027_v9  ;;  %1288 = vmatpush.msrb.mxu1 %v990_v12  ;;  %v786_v11 = vld [vmem:[#allocation4 + $0x30] sm:$0xff]  ;;  %v795_v12 = vld [vmem:[#allocation4 + $0x78] sm:$0xff] }
 0x147   :  { %v694_v23 = vadd.f32 %v693_v20, %v674_v18  ;;  %v782_v18 = vld [vmem:[#allocation4 + $0x10] sm:$0xff]  ;;  %v907_v20 = vld [vmem:[#allocation4 + $0x3f8] sm:$0xff] }
 0x148   :  { %1360 = vmatpush.msra.mxu0 %v1023_v16  ;;  %1289 = vmatpush.msrb.mxu1 %v986_v19  ;;  %v902_v19 = vld [vmem:[#allocation4 + $0x3d0] sm:$0xff] }
 0x149   :  { %v1817_v25 = vmax.f32 %v694_v23, 0.0  ;;  %v903_v23 = vld [vmem:[#allocation4 + $0x3d8] sm:$0xff] }
 0x14a   :  { %1361 = vmatpush.msra.mxu0 %v1019_v21  ;;  %1290 = vmatpush.msrb.mxu1 %v982_v24  ;;  %v791_v21 = vld [vmem:[#allocation4 + $0x58] sm:$0xff] }
 0x14b   :  { %1113 = vmatmul.f32.vlgmr.msrb.gmra.mxu2 %v1817_v25  ;;  %1193 = vmatmul.f32.vlgmr.msra.gmra.mxu1 %v1817_v25  ;;  %v787_v24 = vld [vmem:[#allocation4 + $0x38] sm:$0xff] }
 0x14c   :  { %1217 = vmatpush.msrb.mxu2 %v842_v26  ;;  %1273 = vmatmul.f32.vlgmr.msrb.gmra.mxu0 %v1817_v25  ;;  %v894_v26 = vld [vmem:[#allocation4 + $0x390] sm:$0xff] }
 0x14d   :  { %1291 = vmatpush.msrb.mxu1 %v978_v27  ;;  %1362 = vmatpush.msra.mxu0 %v1015_v30  ;;  %v899_v27 = vld [vmem:[#allocation4 + $0x3b8] sm:$0xff] }
 0x14e   :  { %1218 = vmatpush.msrb.mxu2 %v838_v31  ;;  %v783_v30 = vld [vmem:[#allocation4 + $0x18] sm:$0xff]  ;;  %v890_v31 = vld [vmem:[#allocation4 + $0x370] sm:$0xff] }
 0x14f   :  { %1292 = vmatpush.msrb.mxu1 %v974_v33  ;;  %1363 = vmatpush.msra.mxu0 %v1011_v34  ;;  %v886_v33 = vld [vmem:[#allocation4 + $0x350] sm:$0xff]  ;;  %v891_v34 = vld [vmem:[#allocation4 + $0x378] sm:$0xff] }
 0x150   :  { %1219 = vmatpush.msrb.mxu2 %v834_v35  ;;  %v882_v35 = vld [vmem:[#allocation4 + $0x330] sm:$0xff] }
 0x151   :  { %1297 = vmatpush.msra.mxu1 %v843_v14  ;;  %1364 = vmatpush.msra.mxu0 %v1007_v29  ;;  %v887_v14 = vld [vmem:[#allocation4 + $0x358] sm:$0xff]  ;;  %v878_v29 = vld [vmem:[#allocation4 + $0x310] sm:$0xff] }
 0x152   :  { %1220 = vmatpush.msrb.mxu2 %v830_v38  ;;  %v874_v38 = vld [vmem:[#allocation4 + $0x2f0] sm:$0xff] }
 0x153   :  { %1298 = vmatpush.msra.mxu1 %v839_v39  ;;  %1365 = vmatpush.msra.mxu0 %v1003_v41  ;;  %v713_v59 = vpop.f32.mrf.mxu1  ;;  %v773_v10 = vpop.f32.mrf.mxu0  ;;  %v879_v39 = vld [vmem:[#allocation4 + $0x318] sm:$0xff]  ;;  %v870_v41 = vld [vmem:[#allocation4 + $0x2d0] sm:$0xff] }
 0x154   :  { %1221 = vmatpush.msrb.mxu2 %v826_v42  ;;  %v714_v1 = vadd.f32 %v713_v59, %v434_v57  ;;  %v875_v42 = vld [vmem:[#allocation4 + $0x2f8] sm:$0xff] }
 0x155   :  { %1299 = vmatpush.msra.mxu1 %v835_v43  ;;  %1366 = vmatpush.msra.mxu0 %v999_v44  ;;  %v866_v43 = vld [vmem:[#allocation4 + $0x2b0] sm:$0xff]  ;;  %v955_v57 = vld [vmem:[#allocation4 + $0x578] sm:$0xff] }
 0x156   :  { %1222 = vmatpush.msrb.mxu2 %v822_v45  ;;  %v862_v44 = vld [vmem:[#allocation4 + $0x290] sm:$0xff]  ;;  %v867_v45 = vld [vmem:[#allocation4 + $0x2b8] sm:$0xff] }
 0x157   :  { %1300 = vmatpush.msra.mxu1 %v831_v15  ;;  %1367 = vmatpush.msra.mxu0 %v995_v28  ;;  %v858_v15 = vld [vmem:[#allocation4 + $0x270] sm:$0xff]  ;;  %v863_v28 = vld [vmem:[#allocation4 + $0x298] sm:$0xff] }
 0x158   :  { %1223 = vmatpush.msrb.mxu2 %v818_v46  ;;  %v854_v46 = vld [vmem:[#allocation4 + $0x250] sm:$0xff]  ;;  %v947_v59 = vld [vmem:[#allocation4 + $0x538] sm:$0xff] }
 0x159   :  { %1301 = vmatpush.msra.mxu1 %v827_v47  ;;  %1368 = vmatpush.msra.mxu0 %v991_v48  ;;  %v859_v47 = vld [vmem:[#allocation4 + $0x278] sm:$0xff]  ;;  %v850_v48 = vld [vmem:[#allocation4 + $0x230] sm:$0xff] }
 0x15a   :  { %1224 = vmatpush.msrb.mxu2 %v814_v49  ;;  %v855_v49 = vld [vmem:[#allocation4 + $0x258] sm:$0xff] }
 0x15b   :  { %1302 = vmatpush.msra.mxu1 %v823_v50  ;;  %1369 = vmatpush.msra.mxu0 %v987_v51  ;;  %v846_v50 = vld [vmem:[#allocation4 + $0x210] sm:$0xff]  ;;  %v851_v51 = vld [vmem:[#allocation4 + $0x238] sm:$0xff] }
 0x15c   :  { %1225 = vmatpush.msrb.mxu2 %v810_v52  ;;  %v971_v52 = vld [vmem:[#allocation4 + $0x5f8] sm:$0xff] }
 0x15d   :  { %1303 = vmatpush.msra.mxu1 %v819_v53  ;;  %1370 = vmatpush.msra.mxu0 %v983_v54  ;;  %v847_v53 = vld [vmem:[#allocation4 + $0x218] sm:$0xff] }
 0x15e   :  { %1226 = vmatpush.msrb.mxu2 %v806_v55  ;;  %v967_v54 = vld [vmem:[#allocation4 + $0x5d8] sm:$0xff] }
 0x15f   :  { %1304 = vmatpush.msra.mxu1 %v815_v56  ;;  %1371 = vmatpush.msra.mxu0 %v979_v58  ;;  %v963_v55 = vld [vmem:[#allocation4 + $0x5b8] sm:$0xff] }
 0x160   :  { %1227 = vmatpush.msrb.mxu2 %v802_v60  ;;  %v959_v56 = vld [vmem:[#allocation4 + $0x598] sm:$0xff] }
 0x161   :  { %1305 = vmatpush.msra.mxu1 %v811_v61  ;;  %v733_v2 = vpop.f32.mrf.mxu2  ;;  %1372 = vmatpush.msra.mxu0 %v975_v62  ;;  %v753_v5 = vpop.f32.mrf.mxu3  ;;  %v951_v58 = vld [vmem:[#allocation4 + $0x558] sm:$0xff] }
 0x162   :  { %v734_v37 = vadd.f32 %v733_v2, %v714_v1  ;;  %1228 = vmatpush.msrb.mxu2 %v798_v63  ;;  %v943_v60 = vld [vmem:[#allocation4 + $0x518] sm:$0xff] }
 0x163   :  { %1306 = vmatpush.msra.mxu1 %v807_v0  ;;  %v939_v61 = vld [vmem:[#allocation4 + $0x4f8] sm:$0xff] }
 0x164   :  { %v754_v9 = vadd.f32 %v753_v5, %v734_v37  ;;  %1229 = vmatpush.msrb.mxu2 %v794_v3  ;;  %v935_v62 = vld [vmem:[#allocation4 + $0x4d8] sm:$0xff]  ;;  %v1395_v37 = vld [vmem:[%s2054_s9 + $0x70] sm:$0xff]  ;;  %v1394_v5 = vld [vmem:[%s2054_s9 + $0x68] sm:$0xff] }
 0x165   :  { %1307 = vmatpush.msra.mxu1 %v803_v4  ;;  %v931_v63 = vld [vmem:[#allocation4 + $0x4b8] sm:$0xff] }
 0x166   :  { %v774_v13 = vadd.f32 %v773_v10, %v754_v9  ;;  %1230 = vmatpush.msrb.mxu2 %v790_v6  ;;  %v927_v0 = vld [vmem:[#allocation4 + $0x498] sm:$0xff]  ;;  %v1410_v9 = vld [vmem:[%s2054_s9 + $0xe8] sm:$0xff] }
 0x167   :  { %1308 = vmatpush.msra.mxu1 %v799_v8  ;;  %v919_v1 = vld [vmem:[#allocation4 + $0x458] sm:$0xff]  ;;  %v1393_v8 = vld [vmem:[%s2054_s9 + $0x60] sm:$0xff] }
 0x168   :  { %v779_v16 = vmax.f32 %v774_v13, 0.0  ;;  %1231 = vmatpush.msrb.mxu2 %v786_v11  ;;  %v915_v2 = vld [vmem:[#allocation4 + $0x438] sm:$0xff]  ;;  %v1391_v11 = vld [vmem:[%s2054_s9 + $0x50] sm:$0xff]  ;;  %v1389_v13 = vld [vmem:[%s2054_s9 + $0x40] sm:$0xff] }
 0x169   :  { %1309 = vmatpush.msra.mxu1 %v795_v12  ;;  %v911_v3 = vld [vmem:[#allocation4 + $0x418] sm:$0xff]  ;;  %v1390_v12 = vld [vmem:[%s2054_s9 + $0x48] sm:$0xff] }
 0x16a   :  { %1592 = vmatmul.msk.f32.vlgmr.msrb.gmra.mxu3 %vm439_vm2, %v779_v16  ;;  %1594 = vmatmul.msk.f32.vlgmr.msra.gmra.mxu2 %vm439_vm2, %v779_v16  ;;  %v1396_v4 = vld [vmem:[%s2054_s9 + $0x78] sm:$0xff] }
 0x16b   :  { %1237 = vmatpush.msrb.mxu3 %v906_v17  ;;  %1596 = vmatmul.msk.f32.vlgmr.msrb.gmra.mxu1 %vm439_vm2, %v779_v16  ;;  %v1412_v6 = vld [vmem:[%s2054_s9 + $0xf8] sm:$0xff]  ;;  %v1387_v17 = vld [vmem:[%s2054_s9 + $0x30] sm:$0xff] }
 0x16c   :  { %1598 = vmatmul.msk.f32.vlgmr.msra.gmra.mxu0 %vm439_vm2, %v779_v16  ;;  %1232 = vmatpush.msrb.mxu2 %v782_v18  ;;  %v1392_v10 = vld [vmem:[%s2054_s9 + $0x58] sm:$0xff]  ;;  %v1386_v18 = vld [vmem:[%s2054_s9 + $0x28] sm:$0xff] }
 0x16d   :  { %1238 = vmatpush.msrb.mxu3 %v902_v19  ;;  %1310 = vmatpush.msra.mxu1 %v791_v21  ;;  %v1388_v16 = vld [vmem:[%s2054_s9 + $0x38] sm:$0xff]  ;;  %v1409_v19 = vld [vmem:[%s2054_s9 + $0xe0] sm:$0xff] }
 0x16e   :  { %1317 = vmatpush.msra.mxu2 %v907_v20  ;;  %1454 = vmatpush.msrb.mxu0 %v1396_v4  ;;  %v1385_v20 = vld [vmem:[%s2054_s9 + $0x20] sm:$0xff]  ;;  %v1408_v21 = vld [vmem:[%s2054_s9 + $0xd8] sm:$0xff] }
 0x16f   :  { %1239 = vmatpush.msrb.mxu3 %v898_v22  ;;  %1311 = vmatpush.msra.mxu1 %v787_v24  ;;  %v1384_v22 = vld [vmem:[%s2054_s9 + $0x18] sm:$0xff]  ;;  %v1383_v24 = vld [vmem:[%s2054_s9 + $0x10] sm:$0xff] }
 0x170   :  { %1318 = vmatpush.msra.mxu2 %v903_v23  ;;  %1455 = vmatpush.msrb.mxu0 %v1395_v37  ;;  %v1407_v23 = vld [vmem:[%s2054_s9 + $0xd0] sm:$0xff] }
 0x171   :  { %1240 = vmatpush.msrb.mxu3 %v894_v26  ;;  %1312 = vmatpush.msra.mxu1 %v783_v30  ;;  %v1406_v26 = vld [vmem:[%s2054_s9 + $0xc8] sm:$0xff]  ;;  %v1405_v30 = vld [vmem:[%s2054_s9 + $0xc0] sm:$0xff] }
 0x172   :  { %1319 = vmatpush.msra.mxu2 %v899_v27  ;;  %1153 = vmatmul.f32.vlgmr.msra.gmra.mxu3 %v1806_v7  ;;  %v1382_v27 = vld [vmem:[%s2054_s9 + $0x8] sm:$0xff] }
 0x173   :  { %1233 = vmatmul.f32.vlgmr.msrb.gmra.mxu2 %v1806_v7  ;;  %1241 = vmatpush.msrb.mxu3 %v890_v31  ;;  %v1381_v31 = vld [vmem:[%s2054_s9] sm:$0xff] }
 0x174   :  { %1313 = vmatmul.f32.vlgmr.msra.gmra.mxu1 %v1806_v7  ;;  %1320 = vmatpush.msra.mxu2 %v895_v32  ;;  %v871_v7 = vld [vmem:[#allocation4 + $0x2d8] sm:$0xff] }
 0x175   :  { %1242 = vmatpush.msrb.mxu3 %v886_v33  ;;  %1474 = vmatpush.msrb.mxu1 %v1412_v6  ;;  %v1404_v32 = vld [vmem:[%s2054_s9 + $0xb8] sm:$0xff]  ;;  %v1403_v33 = vld [vmem:[%s2054_s9 + $0xb0] sm:$0xff] }
 0x176   :  { %1321 = vmatpush.msra.mxu2 %v891_v34  ;;  %1456 = vmatpush.msrb.mxu0 %v1394_v5  ;;  %v1402_v34 = vld [vmem:[%s2054_s9 + $0xa8] sm:$0xff]  ;;  %v1441_v5 = vld [vmem:[%s2054_s9 + $0x1e0] sm:$0xff] }
 0x177   :  { %1243 = vmatpush.msrb.mxu3 %v882_v35  ;;  %v1428_v35 = vld [vmem:[%s2054_s9 + $0x178] sm:$0xff] }
 0x178   :  { %1322 = vmatpush.msra.mxu2 %v887_v14  ;;  %1457 = vmatpush.msrb.mxu0 %v1393_v8  ;;  %v1401_v14 = vld [vmem:[%s2054_s9 + $0xa0] sm:$0xff]  ;;  %v1440_v8 = vld [vmem:[%s2054_s9 + $0x1d8] sm:$0xff] }
 0x179   :  { %1244 = vmatpush.msrb.mxu3 %v878_v29  ;;  %v1427_v29 = vld [vmem:[%s2054_s9 + $0x170] sm:$0xff] }
 0x17a   :  { %1323 = vmatpush.msra.mxu2 %v883_v36  ;;  %1458 = vmatpush.msrb.mxu0 %v1392_v10  ;;  %v1400_v36 = vld [vmem:[%s2054_s9 + $0x98] sm:$0xff] }
 0x17b   :  { %1245 = vmatpush.msrb.mxu3 %v874_v38  ;;  %v1426_v38 = vld [vmem:[%s2054_s9 + $0x168] sm:$0xff] }
 0x17c   :  { %1324 = vmatpush.msra.mxu2 %v879_v39  ;;  %1459 = vmatpush.msrb.mxu0 %v1391_v11  ;;  %v1399_v39 = vld [vmem:[%s2054_s9 + $0x90] sm:$0xff] }
 0x17d   :  { %1246 = vmatpush.msrb.mxu3 %v870_v41  ;;  %v1425_v41 = vld [vmem:[%s2054_s9 + $0x160] sm:$0xff]  ;;  %v1439_v11 = vld [vmem:[%s2054_s9 + $0x1d0] sm:$0xff] }
 0x17e   :  { %1325 = vmatpush.msra.mxu2 %v875_v42  ;;  %1460 = vmatpush.msrb.mxu0 %v1390_v12  ;;  %v1398_v42 = vld [vmem:[%s2054_s9 + $0x88] sm:$0xff] }
 0x17f   :  { %1247 = vmatpush.msrb.mxu3 %v866_v43  ;;  %v1424_v43 = vld [vmem:[%s2054_s9 + $0x158] sm:$0xff] }
 0x180   :  { %1326 = vmatpush.msra.mxu2 %v871_v7  ;;  %1461 = vmatpush.msrb.mxu0 %v1389_v13  ;;  %v1397_v7 = vld [vmem:[%s2054_s9 + $0x80] sm:$0xff]  ;;  %v1438_v13 = vld [vmem:[%s2054_s9 + $0x1c8] sm:$0xff] }
 0x181   :  { %1248 = vmatpush.msrb.mxu3 %v862_v44  ;;  %v1423_v44 = vld [vmem:[%s2054_s9 + $0x150] sm:$0xff] }
 0x182   :  { %1327 = vmatpush.msra.mxu2 %v867_v45  ;;  %1462 = vmatpush.msrb.mxu0 %v1388_v16  ;;  %v1950_v45 = vld [vmem:[%s2053_s8] sm:$0xf] }
 0x183   :  { %1249 = vmatpush.msrb.mxu3 %v858_v15  ;;  %v1422_v15 = vld [vmem:[%s2054_s9 + $0x148] sm:$0xff]  ;;  %v1437_v16 = vld [vmem:[%s2054_s9 + $0x1c0] sm:$0xff] }
 0x184   :  { %1328 = vmatpush.msra.mxu2 %v863_v28  ;;  %1463 = vmatpush.msrb.mxu0 %v1387_v17  ;;  %v1421_v28 = vld [vmem:[%s2054_s9 + $0x140] sm:$0xff]  ;;  %v1436_v17 = vld [vmem:[%s2054_s9 + $0x1b8] sm:$0xff] }
 0x185   :  { %1250 = vmatpush.msrb.mxu3 %v854_v46  ;;  %v1034_v46 = vperm.slane %v1950_v45, 0 }
 0x186   :  { %1329 = vmatpush.msra.mxu2 %v859_v47  ;;  %1464 = vmatpush.msrb.mxu0 %v1386_v18  ;;  %v1435_v18 = vld [vmem:[%s2054_s9 + $0x1b0] sm:$0xff] }
 0x187   :  { %1251 = vmatpush.msrb.mxu3 %v850_v48  ;;  %v1420_v48 = vld [vmem:[%s2054_s9 + $0x138] sm:$0xff] }
 0x188   :  { %1330 = vmatpush.msra.mxu2 %v855_v49  ;;  %1465 = vmatpush.msrb.mxu0 %v1385_v20  ;;  %v1036_v20 = vperm.slane %v1950_v45, 2 }
 0x189   :  { %1252 = vmatpush.msrb.mxu3 %v846_v50  ;;  %v1419_v50 = vld [vmem:[%s2054_s9 + $0x130] sm:$0xff] }
 0x18a   :  { %1331 = vmatpush.msra.mxu2 %v851_v51  ;;  %1253 = vmatmul.f32.vlgmr.msrb.gmra.mxu3 %v1810_v40 }
 0x18b   :  { %1337 = vmatpush.msra.mxu3 %v971_v52  ;;  %1466 = vmatpush.msrb.mxu0 %v1384_v22 }
 0x18c   :  { %1332 = vmatpush.msra.mxu2 %v847_v53  ;;  %v1418_v53 = vld [vmem:[%s2054_s9 + $0x128] sm:$0xff] }
 0x18d   :  { %1333 = vmatmul.f32.vlgmr.msra.gmra.mxu2 %v1810_v40  ;;  %1338 = vmatpush.msra.mxu3 %v967_v54  ;;  %v923_v40 = vld [vmem:[#allocation4 + $0x478] sm:$0xff] }
 0x18e   :  { %1467 = vmatpush.msrb.mxu0 %v1383_v24  ;;  %1494 = vmatpush.msrb.mxu2 %v1428_v35  ;;  %v1432_v24 = vld [vmem:[%s2054_s9 + $0x198] sm:$0xff] }
 0x18f   :  { %1339 = vmatpush.msra.mxu3 %v963_v55 }
 0x190   :  { %1468 = vmatpush.msrb.mxu0 %v1382_v27  ;;  %1495 = vmatpush.msrb.mxu2 %v1427_v29 }
 0x191   :  { %1340 = vmatpush.msra.mxu3 %v959_v56 }
 0x192   :  { %1469 = vmatpush.msrb.mxu0 %v1381_v31  ;;  %1496 = vmatpush.msrb.mxu2 %v1426_v38 }
 0x193   :  { %1341 = vmatpush.msra.mxu3 %v955_v57  ;;  %v1417_v57 = vld [vmem:[%s2054_s9 + $0x120] sm:$0xff] }
 0x194   :  { %1497 = vmatpush.msrb.mxu2 %v1425_v41 }
 0x195   :  { %1342 = vmatpush.msra.mxu3 %v951_v58 }
 0x196   :  { %1498 = vmatpush.msrb.mxu2 %v1424_v43 }
 0x197   :  { %1343 = vmatpush.msra.mxu3 %v947_v59  ;;  %v1416_v59 = vld [vmem:[%s2054_s9 + $0x118] sm:$0xff] }
 0x198   :  { %1499 = vmatpush.msrb.mxu2 %v1423_v44 }
 0x199   :  { %1344 = vmatpush.msra.mxu3 %v943_v60 }
 0x19a   :  { %1500 = vmatpush.msrb.mxu2 %v1422_v15 }
 0x19b   :  { %1345 = vmatpush.msra.mxu3 %v939_v61  ;;  %v1415_v61 = vld [vmem:[%s2054_s9 + $0x110] sm:$0xff] }
 0x19c   :  { %1501 = vmatpush.msrb.mxu2 %v1421_v28 }
 0x19d   :  { %1346 = vmatpush.msra.mxu3 %v935_v62  ;;  %v1035_v62 = vperm.slane %v1950_v45, 1 }
 0x19e   :  { %1502 = vmatpush.msrb.mxu2 %v1420_v48 }
 0x19f   :  { %1347 = vmatpush.msra.mxu3 %v931_v63  ;;  %v1414_v63 = vld [vmem:[%s2054_s9 + $0x108] sm:$0xff] }
 0x1a0   :  { %v1074_v47 = vpop.f32.mrf.mxu0  ;;  %1503 = vmatpush.msrb.mxu2 %v1419_v50 }
 0x1a1   :  { %1348 = vmatpush.msra.mxu3 %v927_v0  ;;  %v1075_v51 = vadd.f32 %v1074_v47, %v1034_v46  ;;  %v1413_v0 = vld [vmem:[%s2054_s9 + $0x100] sm:$0xff] }
 0x1a2   :  { %1504 = vmatpush.msrb.mxu2 %v1418_v53  ;;  %v1606_v46 = vld [vmem:[%s2055_s10] ss:$0 sm:$0xff] }
 0x1a3   :  { %1349 = vmatpush.msra.mxu3 %v923_v40 }
 0x1a4   :  { %1505 = vmatpush.msrb.mxu2 %v1417_v57 }
 0x1a5   :  { %1350 = vmatpush.msra.mxu3 %v919_v1 }
 0x1a6   :  { %1506 = vmatpush.msrb.mxu2 %v1416_v59 }
 0x1a7   :  { %1351 = vmatpush.msra.mxu3 %v915_v2  ;;  %v1443_v2 = vld [vmem:[%s2054_s9 + $0x1f0] sm:$0xf] }
 0x1a8   :  { %1507 = vmatpush.msrb.mxu2 %v1415_v61  ;;  %v1555_v61 = vld [vmem:[%s2046_s1] sm:$0xff] }
 0x1a9   :  { %1352 = vmatpush.msra.mxu3 %v911_v3  ;;  %v1442_v3 = vld [vmem:[%s2054_s9 + $0x1e8] sm:$0xff] }
 0x1aa   :  { %1353 = vmatmul.f32.vlgmr.msra.gmra.mxu3 %v1817_v25  ;;  %v1411_v25 = vld [vmem:[%s2054_s9 + $0xf0] sm:$0xff]  ;;  %1508 = vmatpush.msrb.mxu2 %v1414_v63 }
 0x1ab   :  { %1475 = vmatpush.msrb.mxu1 %v1411_v25  ;;  %1599 = vmatpush.msk.msrb.mxu3 %vm443_vm1, %v1443_v2 }
 0x1ac   :  { %1509 = vmatpush.msrb.mxu2 %v1413_v0 }
 0x1ad   :  { %1476 = vmatpush.msrb.mxu1 %v1410_v9  ;;  %1516 = vmatpush.msrb.mxu3 %v1442_v3 }
 0x1ae   :  { %v1094_v49 = vpop.f32.mrf.mxu1  ;;  %v1174_v4 = vpop.f32.mrf.mxu0 }
 0x1af   :  { %1477 = vmatpush.msrb.mxu1 %v1409_v19  ;;  %v1095_v54 = vadd.f32 %v1094_v49, %v1075_v51  ;;  %1517 = vmatpush.msrb.mxu3 %v1441_v5  ;;  %v1434_v19 = vld [vmem:[%s2054_s9 + $0x1a8] sm:$0xff] }
 0x1b1   :  { %1478 = vmatpush.msrb.mxu1 %v1408_v21  ;;  %1518 = vmatpush.msrb.mxu3 %v1440_v8  ;;  %v1433_v21 = vld [vmem:[%s2054_s9 + $0x1a0] sm:$0xff] }
 0x1b3   :  { %1479 = vmatpush.msrb.mxu1 %v1407_v23  ;;  %1519 = vmatpush.msrb.mxu3 %v1439_v11 }
 0x1b5   :  { %1480 = vmatpush.msrb.mxu1 %v1406_v26  ;;  %1520 = vmatpush.msrb.mxu3 %v1438_v13 }
 0x1b7   :  { %1481 = vmatpush.msrb.mxu1 %v1405_v30  ;;  %1521 = vmatpush.msrb.mxu3 %v1437_v16  ;;  %v1431_v30 = vld [vmem:[%s2054_s9 + $0x190] sm:$0xff] }
 0x1b9   :  { %1482 = vmatpush.msrb.mxu1 %v1404_v32  ;;  %1522 = vmatpush.msrb.mxu3 %v1436_v17 }
 0x1bb   :  { %1483 = vmatpush.msrb.mxu1 %v1403_v33  ;;  %1523 = vmatpush.msrb.mxu3 %v1435_v18  ;;  %v1430_v33 = vld [vmem:[%s2054_s9 + $0x188] sm:$0xff] }
 0x1bd   :  { %1484 = vmatpush.msrb.mxu1 %v1402_v34  ;;  %1524 = vmatpush.msrb.mxu3 %v1434_v19 }
 0x1bf   :  { %1485 = vmatpush.msrb.mxu1 %v1401_v14  ;;  %1525 = vmatpush.msrb.mxu3 %v1433_v21  ;;  %v1429_v14 = vld [vmem:[%s2054_s9 + $0x180] sm:$0xff] }
 0x1c1   :  { %1486 = vmatpush.msrb.mxu1 %v1400_v36  ;;  %1526 = vmatpush.msrb.mxu3 %v1432_v24  ;;  %v1037_v36 = vperm.slane %v1950_v45, 3 }
 0x1c3   :  { %1487 = vmatpush.msrb.mxu1 %v1399_v39  ;;  %1527 = vmatpush.msrb.mxu3 %v1431_v30 }
 0x1c5   :  { %1488 = vmatpush.msrb.mxu1 %v1398_v42  ;;  %1528 = vmatpush.msrb.mxu3 %v1430_v33 }
 0x1c7   :  { %1489 = vmatpush.msrb.mxu1 %v1397_v7  ;;  %1529 = vmatpush.msrb.mxu3 %v1429_v14 }
 0x1c8   :  { %v1194_v6 = vpop.f32.mrf.mxu1 }
 0x1c9   :  { %v1274_v31 = vpop.f32.mrf.mxu0 }
 0x1ce   :  { %v1114_v52 = vpop.f32.mrf.mxu2 }
 0x1cf   :  { %v1115_v55 = vadd.f32 %v1114_v52, %v1095_v54 }
 0x1e8   :  { %v1294_v34 = vpop.f32.mrf.mxu1 }
 0x1e9   :  { %v1374_v44 = vpop.f32.mrf.mxu0 }
 0x1ed   :  { %v1134_v56 = vpop.f32.mrf.mxu3  ;;  %v1214_v9 = vpop.f32.mrf.mxu2 }
 0x1ee   :  { %v1135_v58 = vadd.f32 %v1134_v56, %v1115_v55 }
 0x1f0   :  { %v1377_v60 = vmax.f32 %v1135_v58, 0.0 }
 0x1f1   :  { %v1314_v38 = vpop.f32.mrf.mxu1 }
 0x1f2   :  { %1470 = vmatmul.f32.vlgmr.msrb.gmra.mxu0 %v1377_v60  ;;  %v1315_v41 = vadd.f32 %v1314_v38, %v1037_v36  ;;  %v1554_v60 = vld [vmem:[%s2047_s2] sm:$0xff] }
 0x1f5   :  { %v1154_v40 = vpop.f32.mrf.mxu3 }
 0x1f6   :  { %v1155_v1 = vadd.f32 %v1154_v40, %v1035_v62  ;;  %v1234_v22 = vpop.f32.mrf.mxu2 }
 0x1f7   :  { %v1235_v23 = vadd.f32 %v1234_v22, %v1036_v20 }
 0x1f8   :  { %v1175_v37 = vadd.f32 %v1174_v4, %v1155_v1  ;;  %v1556_v1 = vsub.f32 %v1554_v60, %v1555_v61 }
 0x1fa   :  { %v1195_v25 = vadd.f32 %v1194_v6, %v1175_v37  ;;  %v1557_v37 = vmul.f32 %v1556_v1, %v1556_v1 }
 0x1fc   :  { %v1215_v10 = vadd.f32 %v1214_v9, %v1195_v25  ;;  %v1669_v9 = vmov 24.0  }
 0x1fe   :  { %v1378_v12 = vmax.f32 %v1215_v10, 0.0 }
 0x200   :  { %1490 = vmatmul.f32.vlgmr.msrb.gmra.mxu1 %v1378_v12 }
 0x20d   :  { %v1254_v26 = vpop.f32.mrf.mxu3 }
 0x20e   :  { %v1255_v27 = vadd.f32 %v1254_v26, %v1235_v23 }
 0x210   :  { %v1275_v32 = vadd.f32 %v1274_v31, %v1255_v27  ;;  %v1334_v39 = vpop.f32.mrf.mxu2 }
 0x211   :  { %v1335_v42 = vadd.f32 %v1334_v39, %v1315_v41 }
 0x212   :  { %v1295_v35 = vadd.f32 %v1294_v34, %v1275_v32 }
 0x214   :  { %v1379_v29 = vmax.f32 %v1295_v35, 0.0 }
 0x216   :  { %1510 = vmatmul.f32.vlgmr.msrb.gmra.mxu2 %v1379_v29 }
 0x22d   :  { %v1354_v43 = vpop.f32.mrf.mxu3 }
 0x22e   :  { %v1355_v7 = vadd.f32 %v1354_v43, %v1335_v42 }
 0x230   :  { %v1375_v15 = vadd.f32 %v1374_v44, %v1355_v7 }
 0x232   :  { %v1380_v28 = vmax.f32 %v1375_v15, 0.0 }
 0x234   :  { %1600 = vmatmul.msk.f32.vlgmr.msrb.gmra.mxu3 %vm439_vm2, %v1380_v28 }
 0x26f   :  { %v1471_v47 = vpop.f32.mrf.mxu0 }
 0x270   :  { %v1472_v49 = vadd.f32 %v1606_v46, %v1471_v47 }
 0x27d   :  { %v1491_v48 = vpop.f32.mrf.mxu1 }
 0x27e   :  { %v1492_v45 = vadd.f32 %v1491_v48, %v1472_v49 }
 0x299   :  { %v1511_v50 = vpop.f32.mrf.mxu2 }
 0x29a   :  { %v1512_v51 = vadd.f32 %v1511_v50, %v1492_v45 }
 0x2b7   :  { %v1531_v52 = vpop.f32.mrf.mxu3 }
 0x2b8   :  { %v1532_v53 = vadd.f32 %v1531_v52, %v1512_v51 }
 0x2ba   :  { %v1534_v54 = vsub.f32 0.0, %v1532_v53 }
 0x2bc   :  { %v1535_v55 = vmul.f32 1.442695, %v1534_v54 }
 0x2be   :  { %1607 = vpow2.f32 %v1535_v55 }
 0x2c4   :  { %v1608_v56 = vpop.eup %1607 }
 0x2c5   :  { %v1537_v57 = vadd.f32 1.0, %v1608_v56 }
 0x2c7   :  { %1609 = vrcp.f32 %v1537_v57  ;;  %v1549_v63 = vand.u32 2147483648, %v1537_v57  ;;  %v1547_v40 = vand.u32 2147483647, %v1537_v57  ;;  %vm1543_vm4 = vweird.f32 %v1537_v57 }
 0x2c8   :  { %1611 = vrcp.f32 %v1669_v9 }
 0x2c9   :  { %v1550_v3 = vor.u32 1.1754944e-38, %v1549_v63  ;;  %vm1548_vm6 = vcmp.eq.f32.partialorder %v1547_v40, 8.507059e+37 }
 0x2cd   :  { %v1610_v58 = vpop.eup %1609 }
 0x2ce   :  { %v1539_v59 = vmul.f32 %v1610_v58, %v1537_v57  ;;  %vm1544_vm3 = vweird.f32 %v1610_v58  ;;  %v1612_v10 = vpop.eup %1611 }
 0x2cf   :  { %vm1545_vm5 = vmor %vm1543_vm4, %vm1544_vm3  ;;  %v1564_v11 = vmul.f32 24.0, %v1612_v10  ;;  %vm1568_vm8 = vweird.f32 %v1612_v10 }
 0x2d0   :  { %v1540_v62 = vsub.f32 1.0, %v1539_v59 }
 0x2d1   :  { %v1565_v12 = vsub.f32 1.0, %v1564_v11 }
 0x2d2   :  { %v1541_v0 = vmul.f32 %v1610_v58, %v1540_v62 }
 0x2d3   :  { %v1566_v13 = vmul.f32 %v1612_v10, %v1565_v12 }
 0x2d4   :  { %v1542_v2 = vadd.f32 %v1610_v58, %v1541_v0 }
 0x2d5   :  { %v1567_v16 = vadd.f32 %v1612_v10, %v1566_v13 }
 0x2d6   :  { %v1546_v4 = vsel %vm1545_vm5, %v1610_v58, %v1542_v2 }
 0x2d7   :  { %v1551_v5 = vsel %vm1548_vm6, %v1550_v3, %v1546_v4  ;;  %v1569_v17 = vsel %vm1568_vm8, %v1612_v10, %v1567_v16 }
 0x2d8   :  { %v1553_v6 = vmax.f32 %v1551_v5, 0.001 }
 0x2da   :  { %v1558_v25 = vmul.f32 %v1557_v37, %v1553_v6 }
 0x2dc   :  { %v1560_v8 = vsel %vm1559_vm7, %v1558_v25, 0.0 }
 0x2dd   :  { %1561 = vadd.xlane.f32.xlu0 %v1560_v8 }
 0x350   :  { %v1562_v18 = vpop.xlane.xlu0 %1561 }
 0x351   :  { %v1570_v19 = vmul.f32 %v1569_v17, %v1562_v18 }
 0x353   :  { %1572 = vst.msk [vmem:[%s2056_s11] sm:$0xff] %vm1571_vm9, %v1570_v19 }
 0x354   :  { %1577 = vsyncpa [#allocation3], 1 }
 0x355   :  { %1578 = vsyncpa [#allocation5], 1 }

</bundles_post_ra>
